<compile_context>
chip_gen: v7x
topology: tpu7x:2x2x1
jax: 0.10.0
libtpu: 0.0.40
codegen_flags: <defaults>
</compile_context>

<pallas_src>
import functools

import jax
import jax.numpy as jnp
from jax import lax
from jax.experimental import pallas as pl
from jax.experimental.pallas import tpu as pltpu


def _round_up(v, m):
    return -(-v // m) * m


def _upsample_conv_kernel(x_ref, w_ref, b_ref, o_ref, *,
                          cin, jmax, delta, tm, mw_pad):
    """One (batch, row_tile) grid step — computes ALL s*s phases of a row tile.

    x_ref : (1, Hxp, Wxp, Cin)           zero-haloed input (NHWC), full per batch
    w_ref : (jmax*jmax, S2*Cout, Cin)    per-tap, phase-stacked sub-kernels
    b_ref : (S2*Cout, 1) float32         phase-stacked bias
    o_ref : (1, 1, S2*Cout, TM*Mw_pad)   lane-dense output tile
    """
    lflat = tm * mw_pad
    base = pl.multiple_of(pl.program_id(1) * tm, 8)     # tm is a multiple of 8

    acc = None
    for jh in range(jmax):
        r0 = base + (delta - jh)                         # 8-aligned base + small const
        for jw in range(jmax):
            c0 = delta - jw                              # static col start
            win = x_ref[0, pl.ds(r0, tm), c0:c0 + mw_pad, :]   # (TM, Mw_pad, Cin)
            win = win.reshape(lflat, cin)
            wt = w_ref[jh * jmax + jw]                         # (S2*Cout, Cin)
            part = lax.dot_general(
                wt, win, dimension_numbers=(((1,), (1,)), ((), ())),
                preferred_element_type=jnp.float32)            # (S2*Cout, L)
            acc = part if acc is None else acc + part
    o_ref[0, 0] = (acc + b_ref[...]).astype(o_ref.dtype)        # bias add in f32


def upsample_conv_layer(x_nchw, weight, bias, stride, *, row_tile=None,
                        compute_dtype=jnp.bfloat16):
    """ConvTranspose2d(in, out, K, stride) forward, PyTorch semantics.

    x_nchw : (N, Cin, H, W)
    weight : (Cin, Cout, K, K)   (PyTorch ConvTranspose2d layout)
    bias   : (Cout,)
    returns: (N, Cout, (H-1)*stride+K, (W-1)*stride+K)

    compute_dtype=bfloat16 (default) uses bf16 operands with f32 accumulation on the
    MXU (v6e/v7x fast path); compute_dtype=float32 matches PyTorch tightly.
    """
    n, cin, h, w = x_nchw.shape
    wcin, cout, k, k2 = weight.shape
    assert wcin == cin and k == k2
    s = int(stride)
    assert s >= 1
    hout = (h - 1) * s + k
    wout = (w - 1) * s + k

    jmax = -(-k // s)                     # taps per output phase = ceil(K/s)
    delta = jmax - 1                      # zero halo on the input
    t2 = jmax * jmax
    mh = h + delta                        # per-phase output rows (= ceil(hout/s))
    mw = w + delta                        # per-phase output cols
    mw_pad = _round_up(mw, 16)            # 8-aligned sublanes AND 128-aligned L
    sscout = s * s * cout

    cbytes = jnp.dtype(compute_dtype).itemsize
    obytes = jnp.dtype(x_nchw.dtype).itemsize

    # Scoped-VMEM limit from the chip (v5e/v6e: 128 MiB, v7x: 64 MiB per TC).
    try:
        vmem_cap = int(pltpu.get_tpu_info().vmem_capacity_bytes)
    except Exception:
        vmem_cap = 64 << 20
    vmem_limit = int(min(vmem_cap * 0.7, 96 << 20))
    budget = int(vmem_limit * 0.8)

    wxp = mw_pad + delta

    if row_tile is None:
        # Fixed residents: 2x-buffered haloed-input block + lane-padded weights/bias.
        fixed = 2 * (_round_up(mh, 8) + delta) * wxp * cin * cbytes
        fixed += 2 * t2 * sscout * max(cin, 128) * cbytes
        fixed += 2 * sscout * 128 * 4
        # Per tm-row residents: 2x-buffered out tile + f32 accumulator + window operands.
        per_row = mw_pad * (2 * sscout * obytes + sscout * 4
                            + 2 * max(cin, 128) * cbytes)
        tm = max((budget - fixed) // max(per_row, 1), 8)
        # TODO(synk): if `fixed` alone exceeds the budget (very large images), switch
        # the input to memory_space=pl.ANY and make_async_copy (tm+delta)-row slabs.
    else:
        tm = row_tile
    tm = min(int(tm), _round_up(mh, 8))
    if n == 1 and mh > 8:                 # >=2 steps so both v7x TensorCores get work
        tm = min(tm, _round_up(-(-mh // 2), 8))
    tm = max((tm // 8) * 8, 8)            # keep tm a multiple of 8 (aligned windows)
    n_row_tiles = -(-mh // tm)
    mh_pad = n_row_tiles * tm
    hxp = mh_pad + delta
    lflat = tm * mw_pad

    # ---- glue over the SMALL input: NHWC + zero halo ---------------------------
    x = jnp.transpose(x_nchw, (0, 2, 3, 1))
    xpad = jnp.pad(x, ((0, 0),
                       (delta, hxp - delta - h),
                       (delta, wxp - delta - w),
                       (0, 0))).astype(compute_dtype)

    # ---- per-tap, phase-stacked sub-kernels ------------------------------------
    # W[ci,co,ph+s*jh,pw+s*jw] -> w_stack[jh*jmax+jw, (ph*s+pw)*cout+co, ci]
    kpad = s * jmax
    wp = jnp.pad(weight, ((0, 0), (0, 0), (0, kpad - k), (0, kpad - k)))
    wp = wp.reshape(cin, cout, jmax, s, jmax, s)       # [ci, co, jh, ph, jw, pw]
    wp = jnp.transpose(wp, (2, 4, 3, 5, 1, 0))         # [jh, jw, ph, pw, co, ci]
    w_stack = wp.reshape(t2, sscout, cin).astype(compute_dtype)
    b_stack = jnp.tile(bias.astype(jnp.float32), s * s).reshape(sscout, 1)

    kernel = functools.partial(_upsample_conv_kernel, cin=cin, jmax=jmax,
                               delta=delta, tm=tm, mw_pad=mw_pad)

    out_phase = pl.pallas_call(
        kernel,
        out_shape=jax.ShapeDtypeStruct((n, n_row_tiles, sscout, lflat),
                                       x_nchw.dtype),
        grid=(n, n_row_tiles),
        in_specs=[
            # full (small) haloed input per batch; reused across row-tile steps
            pl.BlockSpec((1, hxp, wxp, cin), lambda b, t: (b, 0, 0, 0)),
            # stacked weights / bias: constant index maps, resident across steps
            pl.BlockSpec((t2, sscout, cin), lambda b, t: (0, 0, 0)),
            pl.BlockSpec((sscout, 1), lambda b, t: (0, 0)),
        ],
        out_specs=pl.BlockSpec((1, 1, sscout, lflat), lambda b, t: (b, t, 0, 0)),
        compiler_params=pltpu.CompilerParams(
            dimension_semantics=("parallel", "parallel"),
            vmem_limit_bytes=vmem_limit),
    )(xpad, w_stack, b_stack)

    # ---- interleave the s*s phases back into NCHW (single output transpose) ----
    o = out_phase.reshape(n, n_row_tiles, s, s, cout, tm, mw_pad)
    o = jnp.transpose(o, (0, 4, 1, 5, 2, 6, 3))   # (N, Cout, T, TM, ph, Mw_pad, pw)
    o = o.reshape(n, cout, mh_pad * s, mw_pad * s)
    return o[:, :, :hout, :wout].astype(x_nchw.dtype)


def _reference_conv_transpose(x, weight, bias, stride):
    """Independent scatter-style reference (NCHW), matches nn.ConvTranspose2d."""
    n, cin, h, w = x.shape
    _, cout, k, _ = weight.shape
    s = int(stride)
    hout = (h - 1) * s + k
    wout = (w - 1) * s + k
    out = jnp.zeros((n, cout, hout, wout), jnp.float32)
    contrib = jnp.einsum('nchw,cokl->nohwkl', x, weight)
    for kh in range(k):
        for kw in range(k):
            out = out.at[:, :,
                         kh:kh + (h - 1) * s + 1:s,
                         kw:kw + (w - 1) * s + 1:s].add(contrib[..., kh, kw])
    return out + bias[None, :, None, None]


if __name__ == "__main__":
    key = jax.random.PRNGKey(0)
    k1, k2, k3, k4, k5, k6 = jax.random.split(key, 6)

    # Config A: small shapes consistent with the module's forward (upsample x2).
    N, Cin, H, W = 2, 4, 16, 16
    Cout, K, STRIDE = 8, 3, 2
    x = jax.random.normal(k1, (N, Cin, H, W), jnp.float32)
    weight = jax.random.normal(k2, (Cin, Cout, K, K), jnp.float32) * 0.1
    bias = jax.random.normal(k3, (Cout,), jnp.float32) * 0.1
    y_ref = _reference_conv_transpose(x, weight, bias, STRIDE)

    # f32 path: tight match to PyTorch semantics.
    y32 = upsample_conv_layer(x, weight, bias, STRIDE, compute_dtype=jnp.float32)
    jax.block_until_ready(y32)
    assert y32.shape == (N, Cout, (H - 1) * STRIDE + K, (W - 1) * STRIDE + K), y32.shape
    assert jnp.allclose(y32, y_ref, atol=1e-4, rtol=1e-4), \
        float(jnp.max(jnp.abs(y32 - y_ref)))

    # default bf16-operand path (f32 accumulate): looser tolerance.
    ybf = upsample_conv_layer(x, weight, bias, STRIDE)
    jax.block_until_ready(ybf)
    assert ybf.shape == y_ref.shape, ybf.shape
    assert jnp.allclose(ybf, y_ref, atol=5e-2, rtol=5e-2), \
        float(jnp.max(jnp.abs(ybf - y_ref)))

    # Config B: different geometry (stride 3, kernel 5, non-square, N=1 -> 2 row tiles).
    N2, Cin2, H2, W2, Cout2, K2, S2 = 1, 3, 12, 10, 5, 5, 3
    x2 = jax.random.normal(k4, (N2, Cin2, H2, W2), jnp.float32)
    w2 = jax.random.normal(k5, (Cin2, Cout2, K2, K2), jnp.float32) * 0.1
    b2 = jax.random.normal(k6, (Cout2,), jnp.float32) * 0.1
    y2 = upsample_conv_layer(x2, w2, b2, S2, compute_dtype=jnp.float32)
    jax.block_until_ready(y2)
    y2_ref = _reference_conv_transpose(x2, w2, b2, S2)
    assert y2.shape == y2_ref.shape, (y2.shape, y2_ref.shape)
    assert jnp.allclose(y2, y2_ref, atol=5e-4, rtol=5e-4), \
        float(jnp.max(jnp.abs(y2 - y2_ref)))

    print("KERNEL_OK")
</pallas_src>

<mosaic_0001>
module attributes {stable_mosaic.version = 11 : i64} {
  func.func @_upsample_conv_kernel(%arg0: i32, %arg1: i32, %arg2: memref<1x25x33x4xf32, #tpu.memory_space<vmem>>, %arg3: memref<4x32x4xf32, #tpu.memory_space<vmem>>, %arg4: memref<32x1xf32, #tpu.memory_space<vmem>>, %arg5: memref<1x1x32x768xf32, #tpu.memory_space<vmem>>) attributes {dimension_semantics = [#tpu.dimension_semantics<parallel>, #tpu.dimension_semantics<parallel>], iteration_bounds = array<i64: 2, 1>, scalar_prefetch = 0 : i64, scratch_operands = 0 : i64, tpu.core_type = #tpu.core_type<tc>, window_params = [{transform_indices = @transform_0, window_bounds = array<i64: 1, 25, 33, 4>}, {pipeline_mode = #tpu.pipeline_mode<synchronous>, transform_indices = @transform_1, window_bounds = array<i64: 4, 32, 4>}, {pipeline_mode = #tpu.pipeline_mode<synchronous>, transform_indices = @transform_2, window_bounds = array<i64: 32, 1>}, {transform_indices = @transform_3, window_bounds = array<i64: 1, 1, 32, 768>}]} {
    %c24_i32 = arith.constant 24 : i32
    %0 = arith.muli %arg1, %c24_i32 : i32
    %1 = tpu.assume_multiple %0, 8 : i32
    %c1_i32 = arith.constant 1 : i32
    %2 = arith.addi %1, %c1_i32 : i32
    %c0 = arith.constant 0 : index
    %3 = arith.index_cast %2 : i32 to index
    %c1 = arith.constant 1 : index
    %c0_0 = arith.constant 0 : index
    %4 = vector.load %arg2[%c0, %3, %c1, %c0_0] : memref<1x25x33x4xf32, #tpu.memory_space<vmem>>, vector<1x24x32x4xf32>
    %5 = vector.shape_cast %4 : vector<1x24x32x4xf32> to vector<24x32x4xf32>
    %6 = vector.shape_cast %5 : vector<24x32x4xf32> to vector<768x4xf32>
    %c0_1 = arith.constant 0 : index
    %c0_2 = arith.constant 0 : index
    %c0_3 = arith.constant 0 : index
    %7 = vector.load %arg3[%c0_1, %c0_2, %c0_3] : memref<4x32x4xf32, #tpu.memory_space<vmem>>, vector<1x32x4xf32>
    %8 = vector.shape_cast %7 : vector<1x32x4xf32> to vector<32x4xf32>
    %cst = arith.constant dense<0.000000e+00> : vector<32x768xf32>
    %9 = tpu.matmul %8, %6, %cst {dimension_numbers = #tpu.dot_dimension_numbers<[1], [1], [0], [0], [0, 0, 1, 0], [], []>} : vector<32x4xf32>, vector<768x4xf32>, vector<32x768xf32> -> vector<32x768xf32>
    %c0_4 = arith.constant 0 : index
    %10 = arith.index_cast %2 : i32 to index
    %c0_5 = arith.constant 0 : index
    %c0_6 = arith.constant 0 : index
    %11 = vector.load %arg2[%c0_4, %10, %c0_5, %c0_6] : memref<1x25x33x4xf32, #tpu.memory_space<vmem>>, vector<1x24x32x4xf32>
    %12 = vector.shape_cast %11 : vector<1x24x32x4xf32> to vector<24x32x4xf32>
    %13 = vector.shape_cast %12 : vector<24x32x4xf32> to vector<768x4xf32>
    %c1_7 = arith.constant 1 : index
    %c0_8 = arith.constant 0 : index
    %c0_9 = arith.constant 0 : index
    %14 = vector.load %arg3[%c1_7, %c0_8, %c0_9] : memref<4x32x4xf32, #tpu.memory_space<vmem>>, vector<1x32x4xf32>
    %15 = vector.shape_cast %14 : vector<1x32x4xf32> to vector<32x4xf32>
    %cst_10 = arith.constant dense<0.000000e+00> : vector<32x768xf32>
    %16 = tpu.matmul %15, %13, %cst_10 {dimension_numbers = #tpu.dot_dimension_numbers<[1], [1], [0], [0], [0, 0, 1, 0], [], []>} : vector<32x4xf32>, vector<768x4xf32>, vector<32x768xf32> -> vector<32x768xf32>
    %17 = arith.addf %9, %16 : vector<32x768xf32>
    %c0_i32 = arith.constant 0 : i32
    %18 = arith.addi %1, %c0_i32 : i32
    %c0_11 = arith.constant 0 : index
    %19 = arith.index_cast %18 : i32 to index
    %c1_12 = arith.constant 1 : index
    %c0_13 = arith.constant 0 : index
    %20 = vector.load %arg2[%c0_11, %19, %c1_12, %c0_13] : memref<1x25x33x4xf32, #tpu.memory_space<vmem>>, vector<1x24x32x4xf32>
    %21 = vector.shape_cast %20 : vector<1x24x32x4xf32> to vector<24x32x4xf32>
    %22 = vector.shape_cast %21 : vector<24x32x4xf32> to vector<768x4xf32>
    %c2 = arith.constant 2 : index
    %c0_14 = arith.constant 0 : index
    %c0_15 = arith.constant 0 : index
    %23 = vector.load %arg3[%c2, %c0_14, %c0_15] : memref<4x32x4xf32, #tpu.memory_space<vmem>>, vector<1x32x4xf32>
    %24 = vector.shape_cast %23 : vector<1x32x4xf32> to vector<32x4xf32>
    %cst_16 = arith.constant dense<0.000000e+00> : vector<32x768xf32>
    %25 = tpu.matmul %24, %22, %cst_16 {dimension_numbers = #tpu.dot_dimension_numbers<[1], [1], [0], [0], [0, 0, 1, 0], [], []>} : vector<32x4xf32>, vector<768x4xf32>, vector<32x768xf32> -> vector<32x768xf32>
    %26 = arith.addf %17, %25 : vector<32x768xf32>
    %c0_17 = arith.constant 0 : index
    %27 = arith.index_cast %18 : i32 to index
    %c0_18 = arith.constant 0 : index
    %c0_19 = arith.constant 0 : index
    %28 = vector.load %arg2[%c0_17, %27, %c0_18, %c0_19] : memref<1x25x33x4xf32, #tpu.memory_space<vmem>>, vector<1x24x32x4xf32>
    %29 = vector.shape_cast %28 : vector<1x24x32x4xf32> to vector<24x32x4xf32>
    %30 = vector.shape_cast %29 : vector<24x32x4xf32> to vector<768x4xf32>
    %c3 = arith.constant 3 : index
    %c0_20 = arith.constant 0 : index
    %c0_21 = arith.constant 0 : index
    %31 = vector.load %arg3[%c3, %c0_20, %c0_21] : memref<4x32x4xf32, #tpu.memory_space<vmem>>, vector<1x32x4xf32>
    %32 = vector.shape_cast %31 : vector<1x32x4xf32> to vector<32x4xf32>
    %cst_22 = arith.constant dense<0.000000e+00> : vector<32x768xf32>
    %33 = tpu.matmul %32, %30, %cst_22 {dimension_numbers = #tpu.dot_dimension_numbers<[1], [1], [0], [0], [0, 0, 1, 0], [], []>} : vector<32x4xf32>, vector<768x4xf32>, vector<32x768xf32> -> vector<32x768xf32>
    %34 = arith.addf %26, %33 : vector<32x768xf32>
    %c0_23 = arith.constant 0 : index
    %c0_24 = arith.constant 0 : index
    %35 = vector.load %arg4[%c0_23, %c0_24] : memref<32x1xf32, #tpu.memory_space<vmem>>, vector<32x1xf32>
    %36 = vector.broadcast %35 : vector<32x1xf32> to vector<32x768xf32>
    %37 = arith.addf %34, %36 : vector<32x768xf32>
    %c0_25 = arith.constant 0 : index
    %c0_26 = arith.constant 0 : index
    %c0_27 = arith.constant 0 : index
    %c0_28 = arith.constant 0 : index
    %38 = vector.load %arg5[%c0_25, %c0_26, %c0_27, %c0_28] : memref<1x1x32x768xf32, #tpu.memory_space<vmem>>, vector<1x1x32x768xf32>
    %39 = vector.shape_cast %38 : vector<1x1x32x768xf32> to vector<32x768xf32>
    %40 = vector.shape_cast %37 : vector<32x768xf32> to vector<1x1x32x768xf32>
    tpu.vector_store %arg5[%c0_25, %c0_26, %c0_27, %c0_28], %40 {strides = array<i32>} : memref<1x1x32x768xf32, #tpu.memory_space<vmem>>, vector<1x1x32x768xf32>,
    return
  }
  func.func @transform_0(%arg0: i32, %arg1: i32) -> (i32, i32, i32, i32) {
    %c0_i32 = arith.constant 0 : i32
    %c0_i32_0 = arith.constant 0 : i32
    %c0_i32_1 = arith.constant 0 : i32
    %c0_i32_2 = arith.constant 0 : i32
    return %arg0, %c0_i32, %c0_i32_0, %c0_i32_1 : i32, i32, i32, i32
  }
  func.func @transform_1(%arg0: i32, %arg1: i32) -> (i32, i32, i32) {
    %c0_i32 = arith.constant 0 : i32
    %c0_i32_0 = arith.constant 0 : i32
    %c0_i32_1 = arith.constant 0 : i32
    %c0_i32_2 = arith.constant 0 : i32
    return %c0_i32, %c0_i32_0, %c0_i32_1 : i32, i32, i32
  }
  func.func @transform_2(%arg0: i32, %arg1: i32) -> (i32, i32) {
    %c0_i32 = arith.constant 0 : i32
    %c0_i32_0 = arith.constant 0 : i32
    %c0_i32_1 = arith.constant 0 : i32
    return %c0_i32, %c0_i32_0 : i32, i32
  }
  func.func @transform_3(%arg0: i32, %arg1: i32) -> (i32, i32, i32, i32) {
    %c0_i32 = arith.constant 0 : i32
    %c0_i32_0 = arith.constant 0 : i32
    %c0_i32_1 = arith.constant 0 : i32
    return %arg0, %arg1, %c0_i32, %c0_i32_0 : i32, i32, i32, i32
  }
}

</mosaic_0001>

<bundles_post_ra>
// kernel: tpu_custom_call.1
= control target key start
LH: loop header
LB: loop body
LE: loop exit
PB: predicated region body
PF: predicated region fallthrough
CT: control target
= control target key end

     0   :  { %8 = vsyncpa [#allocation3], 0  ;;  %s6397_s0 = inlined_call_operand.vmem [shape: f32[2,25,33,4], index: 0, kind: input, shape index: {}]   ;;  %s6398_s1 = inlined_call_operand.vmem [shape: f32[4,32,4], index: 1, kind: input, shape index: {}]   ;;  %s6399_s2 = inlined_call_operand.vmem [shape: f32[32,1], index: 2, kind: input, shape index: {}]   ;;  %s6400_s3 = inlined_call_operand.hbm [shape: f32[2,1,32,768], index: 3, kind: output, shape index: {}]  }
   0x1   :  { %10 = vsyncpa [#allocation3 + $0x1], 0  ;;  %s5016_s12 = smov 0   ;;  %s5018_s13 = smov 0  }
   0x2   :  { %s5020_s14 = smov 0   ;;  %s5022_s15 = smov 0  }
   0x3   :  { %s5024_s16 = smov 0   ;;  %s5026_s17 = smov 0  }
   0x4 LB: > { %s3076_s18 = sadd.s32 4294967295, %s4990_s17   ;;  %s3077_s19 = sadd.s32 4294967294, %s4990_s17   ;;  %s4990_s17 = sphi %s5026_s17, %s16_s17   ;;  %s4986_s16 = sphi %s5024_s16, %s6409_s16   ;;  %s4982_s15 = sphi %s5022_s15, %s6408_s15   ;;  %s4978_s14 = sphi %s5020_s14, %s6407_s14   ;;  %s4974_s13 = sphi %s5018_s13, %s6406_s13   ;;  %s4970_s12 = sphi %s5016_s12, %s6405_s12  }
   0x5   : > { %s28_s20 = sadd.s32 1, %s4986_s16  ;;  %s105_s21 = sadd.s32 1, %s4978_s14 }
   0x6   : > { %p30_p0 = scmp.ge.s32.totalorder %s28_s20, 2  ;;  %p115_p1 = scmp.ne.s32.totalorder %s4978_s14, %s4974_s13 }
   0x7   : > { %p116_p2 = scmp.eq.s32.totalorder %s3076_s18, 1  ;;  %p121_p3 = scmp.ne.s32.totalorder %s4974_s13, %s4970_s12 }
   0x8   : > { %s6411_s20 = smov (%p30_p0, %s28_s20), 0  ;;  %p122_p5 = scmp.eq.s32.totalorder %s3077_s19, 1 }
   0x9   : > { %p5056_p4 = por %p116_p2, %p115_p1  ;;  %s100_s23 = ssub.s32 %s4986_s16, %s6411_s20 }
   0xa   : > { %p3080_p6 = scmp.ge.s32.totalorder %s4990_s17, 1  ;;  %p103_p7 = scmp.eq.s32.totalorder %s100_s23, 0 }
   0xb   : > { %p5063_p8 = por %p122_p5, %p121_p3  ;;  %p154_p9 = scmp.lt.s32.totalorder %s4990_s17, 3 }
   0xc   : > { %s5069_s25 = scalar_select %p103_p7, %s4978_s14, %s105_s21  }
   0xd   : > { %p155_p10 = pnand %p3080_p6, %p154_p9 }
   0xe   : > { %p178_p11 = scmp.lt.s32.totalorder (!%p155_p10), %s4982_s15, 1  ;;  %vm388_vm0 = vcmask (!%p155_p10), 31744   ;;  %v5075_v0 = vld [vmem:[%s6398_s1 + $0x20] sm:$0xff] (!%p155_p10)  ;;  %s4851_s21 = smul.u32 (!%p155_p10), 3072, %s4982_s15 }
   0xf   : > { %158 = sbr.rel (%p155_p10) target bundleno = 660 (0x294), region = 32  ;;  %v5080_v1 = vld [vmem:[%s6398_s1] sm:$0xff] (!%p155_p10)  ;;  %3753 = vmatprep.mubr.msk.f32.mxu1 (!%p155_p10), %vm388_vm0, %v5075_v0  ;;  %vm5094_vm1 = vmpackc.low (!%p155_p10), %vm388_vm0, %vm388_vm0 }
  0x10   : > { %3873 = vmatprep.mubr.msk.f32.mxu0 (!%p155_p10), %vm388_vm0, %v5080_v1  ;;  %s6342_s27 = scalar_lea.hbm (!%p155_p10), %s6400_s3, %s4851_s21 }
  0x16   : > { %s179_s30 = scalar_select %p178_p11, %s4982_s15, 1 }
  0x18   : > { %s4850_s4 = smul.u32 1000, %s179_s30  ;;  %s4993_s30 = smov [#allocation2]  }
  0x1a   : > { %s5090_s7 = scalar_lea.vmem %s6397_s0, %s4850_s4  ;;  %s4916_s4 = sshll.u32 %s4993_s30, 4  ;;  %s4917_s4 = int_to_ptr.vmem [resolvable:$false] %s4916_s4 }
  0x1b   : > { %v3194_v3 = vld [vmem:[%s5090_s7 + $0xc8] sm:$0xff]  ;;  %v3195_v4 = vld [vmem:[%s5090_s7 + $0xd0] sm:$0xff]  ;;  %v3196_v14 = vld [vmem:[%s5090_s7 + $0xd8] sm:$0xff]  ;;  %s4918_s5 = scalar_lea.vmem %s4917_s4, 6144 }
  0x1c   : > { %v3098_v5 = vld [vmem:[%s5090_s7 + $0xc9] sm:$0xff]  ;;  %v4201_v6 = vpack.c.bf16 %v3195_v4, %v3194_v3  ;;  %v3099_v7 = vld [vmem:[%s5090_s7 + $0xd1] sm:$0xff]  ;;  %v3197_v16 = vld [vmem:[%s5090_s7 + $0xe0] sm:$0xff] }
  0x1d   : > { %v3178_v8 = vld [vmem:[%s5090_s7 + $0x28] sm:$0xff]  ;;  %v3179_v9 = vld [vmem:[%s5090_s7 + $0x30] sm:$0xff]  ;;  %v5104_v10 = vpack.c.bf16 %v3099_v7, %v3098_v5  ;;  %v3100_v17 = vld [vmem:[%s5090_s7 + $0xd9] sm:$0xff]  ;;  %v4207_v19 = vpack.c.bf16 %v3197_v16, %v3196_v14 }
  0x1e   : > { %v4204_v11 = vpack.c.bf16 %v3179_v9, %v3178_v8  ;;  %v3082_v12 = vld [vmem:[%s5090_s7 + $0x29] sm:$0xff]  ;;  %v3083_v13 = vld [vmem:[%s5090_s7 + $0x31] sm:$0xff]  ;;  %4203 = vmatprep.subr.msk.bf16.mxu1 %vm5094_vm1, %v4201_v6  ;;  %v3101_v18 = vld [vmem:[%s5090_s7 + $0xe1] sm:$0xff] }
  0x1f   : > { %v5111_v15 = vpack.c.bf16 %v3083_v13, %v3082_v12  ;;  %4347 = vmatprep.subr.msk.bf16.mxu0 %vm5094_vm1, %v5104_v10  ;;  %v5121_v20 = vpack.c.bf16 %v3101_v18, %v3100_v17  ;;  %v3180_v21 = vld [vmem:[%s5090_s7 + $0x38] sm:$0xff]  ;;  %v3181_v22 = vld [vmem:[%s5090_s7 + $0x40] sm:$0xff]  ;;  %v3198_v25 = vld [vmem:[%s5090_s7 + $0xf0] sm:$0xff] }
  0x20   : > { %4206 = vmatpush3.bf16.xpose.msk.msra.mxu1 %vm5094_vm1, %v4204_v11  ;;  %v3084_v23 = vld [vmem:[%s5090_s7 + $0x39] sm:$0xff]  ;;  %v3085_v24 = vld [vmem:[%s5090_s7 + $0x41] sm:$0xff]  ;;  %v3102_v27 = vld [vmem:[%s5090_s7 + $0xf1] sm:$0xff]  ;;  %v4210_v29 = vpack.c.bf16 %v3181_v22, %v3180_v21 }
  0x21   : > { %4350 = vmatpush3.bf16.xpose.msk.msra.mxu0 %vm5094_vm1, %v5111_v15  ;;  %4209 = vmatprep.subr.msk.bf16.mxu1 %vm5094_vm1, %v4207_v19  ;;  %v3199_v26 = vld [vmem:[%s5090_s7 + $0xf8] sm:$0xff]  ;;  %v5139_v30 = vpack.c.bf16 %v3085_v24, %v3084_v23  ;;  %v3182_v33 = vld [vmem:[%s5090_s7 + $0x50] sm:$0xff]  ;;  %v3200_v37 = vld [vmem:[%s5090_s7 + $0x100] sm:$0xff] }
  0x22   : > { %4353 = vmatprep.subr.msk.bf16.mxu0 %vm5094_vm1, %v5121_v20  ;;  %v3103_v28 = vld [vmem:[%s5090_s7 + $0xf9] sm:$0xff]  ;;  %v4213_v31 = vpack.c.bf16 %v3199_v26, %v3198_v25  ;;  %v3086_v35 = vld [vmem:[%s5090_s7 + $0x51] sm:$0xff]  ;;  %v3201_v38 = vld [vmem:[%s5090_s7 + $0x108] sm:$0xff] }
  0x23   : > { %v5141_v32 = vpack.c.bf16 %v3103_v28, %v3102_v27  ;;  %v3183_v34 = vld [vmem:[%s5090_s7 + $0x58] sm:$0xff]  ;;  %v3104_v39 = vld [vmem:[%s5090_s7 + $0x101] sm:$0xff]  ;;  %v3105_v40 = vld [vmem:[%s5090_s7 + $0x109] sm:$0xff]  ;;  %v4219_v43 = vpack.c.bf16 %v3201_v38, %v3200_v37 }
  0x24   : > { %v3087_v36 = vld [vmem:[%s5090_s7 + $0x59] sm:$0xff]  ;;  %v4216_v41 = vpack.c.bf16 %v3183_v34, %v3182_v33  ;;  %v5163_v44 = vpack.c.bf16 %v3105_v40, %v3104_v39  ;;  %v3185_v46 = vld [vmem:[%s5090_s7 + $0x68] sm:$0xff]  ;;  %v3205_v62 = vld [vmem:[%s5090_s7 + $0x130] sm:$0xff] }
  0x25   : > { %v5161_v42 = vpack.c.bf16 %v3087_v36, %v3086_v35  ;;  %v3184_v45 = vld [vmem:[%s5090_s7 + $0x60] sm:$0xff]  ;;  %v3089_v48 = vld [vmem:[%s5090_s7 + $0x69] sm:$0xff]  ;;  %v3202_v49 = vld [vmem:[%s5090_s7 + $0x118] sm:$0xff] }
  0x26   : > { %v3088_v47 = vld [vmem:[%s5090_s7 + $0x61] sm:$0xff]  ;;  %v3106_v51 = vld [vmem:[%s5090_s7 + $0x119] sm:$0xff]  ;;  %v4222_v53 = vpack.c.bf16 %v3185_v46, %v3184_v45  ;;  %v3108_v63 = vld [vmem:[%s5090_s7 + $0x129] sm:$0xff] }
  0x27   : > { %v3203_v50 = vld [vmem:[%s5090_s7 + $0x120] sm:$0xff]  ;;  %v5183_v54 = vpack.c.bf16 %v3089_v48, %v3088_v47  ;;  %v3186_v57 = vld [vmem:[%s5090_s7 + $0x78] sm:$0xff]  ;;  %v3204_v61 = vld [vmem:[%s5090_s7 + $0x128] sm:$0xff] }
  0x28   : > { %4212 = vmatpush3.bf16.xpose.msk.msra.mxu1 %vm5094_vm1, %v4210_v29  ;;  %v3107_v52 = vld [vmem:[%s5090_s7 + $0x121] sm:$0xff]  ;;  %v4225_v55 = vpack.c.bf16 %v3203_v50, %v3202_v49  ;;  %v3090_v59 = vld [vmem:[%s5090_s7 + $0x79] sm:$0xff]  ;;  %v3109_v3 = vld [vmem:[%s5090_s7 + $0x131] sm:$0xff]  ;;  %v4231_v6 = vpack.c.bf16 %v3205_v62, %v3204_v61 }
  0x29   : > { %4356 = vmatpush3.bf16.xpose.msk.msra.mxu0 %vm5094_vm1, %v5139_v30  ;;  %4215 = vmatprep.subr.msk.bf16.mxu1 %vm5094_vm1, %v4213_v31  ;;  %v5185_v56 = vpack.c.bf16 %v3107_v52, %v3106_v51  ;;  %v3187_v58 = vld [vmem:[%s5090_s7 + $0x80] sm:$0xff]  ;;  %v5207_v7 = vpack.c.bf16 %v3109_v3, %v3108_v63  ;;  %v3188_v8 = vld [vmem:[%s5090_s7 + $0x88] sm:$0xff]  ;;  %v3189_v9 = vld [vmem:[%s5090_s7 + $0x90] sm:$0xff] }
  0x2a   : > { %4359 = vmatprep.subr.msk.bf16.mxu0 %vm5094_vm1, %v5141_v32  ;;  %v3091_v60 = vld [vmem:[%s5090_s7 + $0x81] sm:$0xff]  ;;  %v4228_v4 = vpack.c.bf16 %v3187_v58, %v3186_v57  ;;  %v3092_v11 = vld [vmem:[%s5090_s7 + $0x89] sm:$0xff]  ;;  %v3093_v12 = vld [vmem:[%s5090_s7 + $0x91] sm:$0xff]  ;;  %v4234_v18 = vpack.c.bf16 %v3189_v9, %v3188_v8 }
  0x2b   : > { %v5205_v5 = vpack.c.bf16 %v3091_v60, %v3090_v59  ;;  %v3206_v13 = vld [vmem:[%s5090_s7 + $0x140] sm:$0xff]  ;;  %v3207_v14 = vld [vmem:[%s5090_s7 + $0x148] sm:$0xff]  ;;  %v5227_v19 = vpack.c.bf16 %v3093_v12, %v3092_v11  ;;  %v3208_v27 = vld [vmem:[%s5090_s7 + $0x150] sm:$0xff] }
  0x2c   : > { %v3110_v16 = vld [vmem:[%s5090_s7 + $0x141] sm:$0xff]  ;;  %v3111_v17 = vld [vmem:[%s5090_s7 + $0x149] sm:$0xff]  ;;  %v4237_v21 = vpack.c.bf16 %v3207_v14, %v3206_v13  ;;  %v3209_v28 = vld [vmem:[%s5090_s7 + $0x158] sm:$0xff] }
  0x2d   : > { %v5229_v22 = vpack.c.bf16 %v3111_v17, %v3110_v16  ;;  %v3190_v23 = vld [vmem:[%s5090_s7 + $0xa0] sm:$0xff]  ;;  %v3191_v24 = vld [vmem:[%s5090_s7 + $0xa8] sm:$0xff]  ;;  %v3112_v29 = vld [vmem:[%s5090_s7 + $0x151] sm:$0xff]  ;;  %v4243_v35 = vpack.c.bf16 %v3209_v28, %v3208_v27 }
  0x2e   : > { %v3094_v25 = vld [vmem:[%s5090_s7 + $0xa1] sm:$0xff]  ;;  %v3095_v26 = vld [vmem:[%s5090_s7 + $0xa9] sm:$0xff]  ;;  %v3113_v31 = vld [vmem:[%s5090_s7 + $0x159] sm:$0xff]  ;;  %v5249_v33 = vpack.c.bf16 %v3191_v24, %v3190_v23 }
  0x2f   : > { %v5251_v34 = vpack.c.bf16 %v3095_v26, %v3094_v25  ;;  %v5253_v36 = vpack.c.bf16 %v3113_v31, %v3112_v29  ;;  %v3192_v37 = vld [vmem:[%s5090_s7 + $0xb0] sm:$0xff]  ;;  %v3193_v38 = vld [vmem:[%s5090_s7 + $0xb8] sm:$0xff]  ;;  %v3210_v51 = vld [vmem:[%s5090_s7 + $0x168] sm:$0xff] }
  0x30   : > { %4218 = vmatpush3.bf16.xpose.msk.msra.mxu1 %vm5094_vm1, %v4216_v41  ;;  %v3096_v39 = vld [vmem:[%s5090_s7 + $0xb1] sm:$0xff]  ;;  %v3097_v40 = vld [vmem:[%s5090_s7 + $0xb9] sm:$0xff]  ;;  %v3226_v41 = vld [vmem:[%s5090_s7 + $0x208] sm:$0xff]  ;;  %v5274_v47 = vpack.c.bf16 %v3193_v38, %v3192_v37 }
  0x31   : > { %4362 = vmatpush3.bf16.xpose.msk.msra.mxu0 %vm5094_vm1, %v5161_v42  ;;  %4221 = vmatprep.subr.msk.bf16.mxu1 %vm5094_vm1, %v4219_v43  ;;  %v3227_v43 = vld [vmem:[%s5090_s7 + $0x210] sm:$0xff]  ;;  %v5276_v48 = vpack.c.bf16 %v3097_v40, %v3096_v39  ;;  %v3228_v57 = vld [vmem:[%s5090_s7 + $0x218] sm:$0xff]  ;;  %v3229_v58 = vld [vmem:[%s5090_s7 + $0x220] sm:$0xff] }
  0x32   : > { %4365 = vmatprep.subr.msk.bf16.mxu0 %vm5094_vm1, %v5163_v44  ;;  %v3162_v45 = vld [vmem:[%s5090_s7 + $0x349] sm:$0xff]  ;;  %v3163_v46 = vld [vmem:[%s5090_s7 + $0x351] sm:$0xff]  ;;  %v4249_v49 = vpack.c.bf16 %v3227_v43, %v3226_v41  ;;  %v3164_v59 = vld [vmem:[%s5090_s7 + $0x359] sm:$0xff]  ;;  %v4255_v63 = vpack.c.bf16 %v3229_v58, %v3228_v57 }
  0x33   : > { %v5278_v50 = vpack.c.bf16 %v3163_v46, %v3162_v45  ;;  %v3211_v52 = vld [vmem:[%s5090_s7 + $0x170] sm:$0xff]  ;;  %v3165_v60 = vld [vmem:[%s5090_s7 + $0x361] sm:$0xff]  ;;  %v3212_v11 = vld [vmem:[%s5090_s7 + $0x178] sm:$0xff] }
  0x34   : > { %v4252_v61 = vpack.c.bf16 %v3211_v52, %v3210_v51  ;;  %v5301_v3 = vpack.c.bf16 %v3165_v60, %v3164_v59  ;;  %v5322_v8 = vld [vmem:[%s6398_s1 + $0x30] sm:$0xff]  ;;  %v3213_v12 = vld [vmem:[%s5090_s7 + $0x180] sm:$0xff]  ;;  %v3231_v17 = vld [vmem:[%s5090_s7 + $0x238] sm:$0xff] }
  0x35   : > { %v5327_v9 = vld [vmem:[%s6398_s1 + $0x10] sm:$0xff]  ;;  %v3148_v13 = vld [vmem:[%s5090_s7 + $0x2b9] sm:$0xff]  ;;  %v3149_v14 = vld [vmem:[%s5090_s7 + $0x2c1] sm:$0xff]  ;;  %v4258_v23 = vpack.c.bf16 %v3213_v12, %v3212_v11 }
  0x36   : > { %v3230_v16 = vld [vmem:[%s5090_s7 + $0x230] sm:$0xff]  ;;  %v5355_v24 = vpack.c.bf16 %v3149_v14, %v3148_v13  ;;  %v5366_v27 = vld [vmem:[%s6398_s1 + $0x38] sm:$0xff]  ;;  %v3232_v38 = vld [vmem:[%s5090_s7 + $0x240] sm:$0xff] }
  0x37   : > { %v4261_v25 = vpack.c.bf16 %v3231_v17, %v3230_v16  ;;  %v5375_v28 = vld [vmem:[%s6398_s1 + $0x18] sm:$0xff]  ;;  %v3214_v29 = vld [vmem:[%s5090_s7 + $0x190] sm:$0xff]  ;;  %v3233_v39 = vld [vmem:[%s5090_s7 + $0x248] sm:$0xff] }
  0x38   : > { %4224 = vmatpush3.bf16.xpose.msk.msra.mxu1 %vm5094_vm1, %v4222_v53  ;;  %v3146_v53 = vld [vmem:[%s5090_s7 + $0x2a9] sm:$0xff]  ;;  %v3215_v31 = vld [vmem:[%s5090_s7 + $0x198] sm:$0xff]  ;;  %v3168_v40 = vld [vmem:[%s5090_s7 + $0x381] sm:$0xff]  ;;  %v4267_v46 = vpack.c.bf16 %v3233_v39, %v3232_v38 }
  0x39   : > { %4368 = vmatpush3.bf16.xpose.msk.msra.mxu0 %vm5094_vm1, %v5183_v54  ;;  %4227 = vmatprep.subr.msk.bf16.mxu1 %vm5094_vm1, %v4225_v55  ;;  %v3147_v55 = vld [vmem:[%s5090_s7 + $0x2b1] sm:$0xff]  ;;  %v3151_v37 = vld [vmem:[%s5090_s7 + $0x2d9] sm:$0xff]  ;;  %v3169_v41 = vld [vmem:[%s5090_s7 + $0x389] sm:$0xff]  ;;  %v4264_v43 = vpack.c.bf16 %v3215_v31, %v3214_v29 }
  0x3a   : > { %4371 = vmatprep.subr.msk.bf16.mxu0 %vm5094_vm1, %v5185_v56  ;;  %v5299_v62 = vpack.c.bf16 %v3147_v55, %v3146_v53  ;;  %v3216_v51 = vld [vmem:[%s5090_s7 + $0x1a0] sm:$0xff]  ;;  %v3217_v52 = vld [vmem:[%s5090_s7 + $0x1a8] sm:$0xff]  ;;  %v3234_v57 = vld [vmem:[%s5090_s7 + $0x258] sm:$0xff] }
  0x3b   : > { %v3152_v53 = vld [vmem:[%s5090_s7 + $0x2e1] sm:$0xff]  ;;  %v3153_v55 = vld [vmem:[%s5090_s7 + $0x2e9] sm:$0xff]  ;;  %v3170_v59 = vld [vmem:[%s5090_s7 + $0x399] sm:$0xff] }
  0x3c   : > { %v3235_v58 = vld [vmem:[%s5090_s7 + $0x260] sm:$0xff]  ;;  %v3218_v13 = vld [vmem:[%s5090_s7 + $0x1b8] sm:$0xff]  ;;  %v3220_v38 = vld [vmem:[%s5090_s7 + $0x1c8] sm:$0xff] }
  0x3d   : > { %v3171_v60 = vld [vmem:[%s5090_s7 + $0x3a1] sm:$0xff]  ;;  %v4273_v11 = vpack.c.bf16 %v3235_v58, %v3234_v57  ;;  %v3154_v16 = vld [vmem:[%s5090_s7 + $0x2f9] sm:$0xff]  ;;  %v3221_v39 = vld [vmem:[%s5090_s7 + $0x1d0] sm:$0xff] }
  0x3e   : > { %v5429_v12 = vpack.c.bf16 %v3171_v60, %v3170_v59  ;;  %v3219_v14 = vld [vmem:[%s5090_s7 + $0x1c0] sm:$0xff]  ;;  %v3223_v60 = vld [vmem:[%s5090_s7 + $0x1e8] sm:$0xff] }
  0x3f   : > { %v3155_v17 = vld [vmem:[%s5090_s7 + $0x301] sm:$0xff]  ;;  %v4276_v29 = vpack.c.bf16 %v3219_v14, %v3218_v13  ;;  %v3240_v13 = vld [vmem:[%s5090_s7 + $0x290] sm:$0xff]  ;;  %v3241_v14 = vld [vmem:[%s5090_s7 + $0x298] sm:$0xff] }
  0x40   : > { %4230 = vmatpush3.bf16.xpose.msk.msra.mxu1 %vm5094_vm1, %v4228_v4  ;;  %v5308_v4 = vld [vmem:[%s6398_s1 + $0x28] sm:$0xff]  ;;  %v5449_v31 = vpack.c.bf16 %v3155_v17, %v3154_v16  ;;  %v3222_v59 = vld [vmem:[%s5090_s7 + $0x1e0] sm:$0xff]  ;;  %v3176_v16 = vld [vmem:[%s5090_s7 + $0x3d1] sm:$0xff] }
  0x41   : > { %4374 = vmatpush3.bf16.xpose.msk.msra.mxu0 %vm5094_vm1, %v5205_v5  ;;  %4233 = vmatprep.subr.msk.bf16.mxu1 %vm5094_vm1, %v4231_v6  ;;  %v5317_v6 = vld [vmem:[%s6398_s1 + $0x8] sm:$0xff]  ;;  %v3177_v17 = vld [vmem:[%s5090_s7 + $0x3d9] sm:$0xff] }
  0x42   : > { %4377 = vmatprep.subr.msk.bf16.mxu0 %vm5094_vm1, %v5207_v7 }
  0x48   : > { %4236 = vmatpush3.bf16.xpose.msk.msra.mxu1 %vm5094_vm1, %v4234_v18  ;;  %v3166_v18 = vld [vmem:[%s5090_s7 + $0x371] sm:$0xff] }
  0x49   : > { %4380 = vmatpush3.bf16.xpose.msk.msra.mxu0 %vm5094_vm1, %v5227_v19  ;;  %4239 = vmatprep.subr.msk.bf16.mxu1 %vm5094_vm1, %v4237_v21  ;;  %v3167_v21 = vld [vmem:[%s5090_s7 + $0x379] sm:$0xff] }
  0x4a   : > { %4383 = vmatprep.subr.msk.bf16.mxu0 %vm5094_vm1, %v5229_v22  ;;  %v5359_v26 = vpack.c.bf16 %v3167_v21, %v3166_v18  ;;  %v3236_v18 = vld [vmem:[%s5090_s7 + $0x268] sm:$0xff]  ;;  %v3237_v21 = vld [vmem:[%s5090_s7 + $0x270] sm:$0xff] }
  0x50   : > { %4242 = vmatpush3.bf16.xpose.msk.msra.mxu1 %vm5094_vm1, %v5249_v33 }
  0x51   : > { %4386 = vmatpush3.bf16.xpose.msk.msra.mxu0 %vm5094_vm1, %v5251_v34  ;;  %4245 = vmatprep.subr.msk.bf16.mxu1 %vm5094_vm1, %v4243_v35  ;;  %v3150_v35 = vld [vmem:[%s5090_s7 + $0x2d1] sm:$0xff] }
  0x52   : > { %4389 = vmatprep.subr.msk.bf16.mxu0 %vm5094_vm1, %v5253_v36  ;;  %v5403_v45 = vpack.c.bf16 %v3151_v37, %v3150_v35  ;;  %v4279_v35 = vpack.c.bf16 %v3237_v21, %v3236_v18  ;;  %v5493_v18 = vpack.c.bf16 %v3223_v60, %v3222_v59  ;;  %v1526_v59 = vld [vmem:[%s5090_s7 + $0x9] sm:$0xff]  ;;  %v3260_v60 = vld [vmem:[%s5090_s7 + $0x358] sm:$0xff] }
  0x58   : > { %4248 = vmatpush3.bf16.xpose.msk.msra.mxu1 %vm5094_vm1, %v5274_v47 }
  0x59   : > { %4392 = vmatpush3.bf16.xpose.msk.msra.mxu0 %vm5094_vm1, %v5276_v48  ;;  %4251 = vmatprep.subr.msk.bf16.mxu1 %vm5094_vm1, %v4249_v49  ;;  %v5407_v49 = vpack.c.bf16 %v3169_v41, %v3168_v40  ;;  %v3156_v40 = vld [vmem:[%s5090_s7 + $0x309] sm:$0xff]  ;;  %v3157_v41 = vld [vmem:[%s5090_s7 + $0x311] sm:$0xff] }
  0x5a   : > { %4443 = vmatprep.subr.msk.bf16.mxu0 %vm5094_vm1, %v5278_v50 }
  0x5f   : > { %3754 = vmatmul.mubr.msk.f32.vlgmr.msra.gmra.mrb[0].mxu1 %vm388_vm0, %v5075_v0 }
  0x60   : > { %4254 = vmatpush3.bf16.xpose.msk.msra.mxu1 %vm5094_vm1, %v4252_v61  ;;  %3874 = vmatmul.mubr.msk.f32.vlgmr.msra.gmra.mrb[0].mxu0 %vm388_vm0, %v5080_v1  ;;  %v4270_v61 = vpack.c.bf16 %v3217_v52, %v3216_v51  ;;  %v3174_v51 = vld [vmem:[%s5090_s7 + $0x3c1] sm:$0xff]  ;;  %v3175_v52 = vld [vmem:[%s5090_s7 + $0x3c9] sm:$0xff] }
  0x61   : > { %4446 = vmatpush3.bf16.xpose.msk.msra.mxu0 %vm5094_vm1, %v5299_v62  ;;  %4257 = vmatprep.subr.msk.bf16.mxu1 %vm5094_vm1, %v4255_v63  ;;  %v5427_v63 = vpack.c.bf16 %v3153_v55, %v3152_v53  ;;  %v4282_v53 = vpack.c.bf16 %v3221_v39, %v3220_v38  ;;  %v5471_v55 = vpack.c.bf16 %v3157_v41, %v3156_v40  ;;  %v3160_v38 = vld [vmem:[%s5090_s7 + $0x331] sm:$0xff]  ;;  %v3161_v39 = vld [vmem:[%s5090_s7 + $0x339] sm:$0xff]  ;;  %v3258_v40 = vld [vmem:[%s5090_s7 + $0x348] sm:$0xff] }
  0x62   : > { %4449 = vmatprep.subr.msk.bf16.mxu0 %vm5094_vm1, %v5301_v3  ;;  %3755 = vmatprep.mubr.msk.f32.mxu1 %vm388_vm0, %v5308_v4  ;;  %v4477_v58 = vpack.c.bf16 %v3175_v52, %v3174_v51  ;;  %v3259_v41 = vld [vmem:[%s5090_s7 + $0x350] sm:$0xff]  ;;  %v3242_v52 = vld [vmem:[%s5090_s7 + $0x2a8] sm:$0xff] }
  0x63   : > { %3875 = vmatprep.mubr.msk.f32.mxu0 %vm388_vm0, %v5317_v6  ;;  %3756 = vmatmul.mubr.msk.f32.gmra.mrb[2].mxu1 %vm388_vm0, %v5308_v4  ;;  %v5520_v51 = vpack.c.bf16 %v3259_v41, %v3258_v40  ;;  %v3246_v40 = vld [vmem:[%s5090_s7 + $0x2d0] sm:$0xff]  ;;  %v3247_v41 = vld [vmem:[%s5090_s7 + $0x2d8] sm:$0xff] }
  0x64   : > { %3876 = vmatmul.mubr.msk.f32.gmra.mrb[2].mxu0 %vm388_vm0, %v5317_v6  ;;  %3757 = vmatprep.mubr.msk.f32.mxu1 %vm388_vm0, %v5322_v8 }
  0x65   : > { %3877 = vmatprep.mubr.msk.f32.mxu0 %vm388_vm0, %v5327_v9 }
  0x67   : > { %3758 = vmatmul.mubr.msk.f32.gmra.mrb[4].mxu1 %vm388_vm0, %v5322_v8 }
  0x68   : > { %4260 = vmatpush3.bf16.xpose.msk.msra.mxu1 %vm5094_vm1, %v4258_v23  ;;  %3878 = vmatmul.mubr.msk.f32.gmra.mrb[4].mxu0 %vm388_vm0, %v5327_v9  ;;  %v3172_v23 = vld [vmem:[%s5090_s7 + $0x3a9] sm:$0xff] }
  0x69   : > { %4452 = vmatpush3.bf16.xpose.msk.msra.mxu0 %vm5094_vm1, %v5355_v24  ;;  %4263 = vmatprep.subr.msk.bf16.mxu1 %vm5094_vm1, %v4261_v25  ;;  %v3173_v25 = vld [vmem:[%s5090_s7 + $0x3b1] sm:$0xff] }
  0x6a   : > { %4455 = vmatprep.subr.msk.bf16.mxu0 %vm5094_vm1, %v5359_v26  ;;  %3759 = vmatprep.mubr.msk.f32.mxu1 %vm388_vm0, %v5366_v27  ;;  %v5451_v37 = vpack.c.bf16 %v3173_v25, %v3172_v23  ;;  %v5497_v23 = vpack.c.bf16 %v3241_v14, %v3240_v13  ;;  %v4483_v25 = vpack.c.bf16 %v3177_v17, %v3176_v16  ;;  %v3245_v16 = vld [vmem:[%s5090_s7 + $0x2c0] sm:$0xff]  ;;  %v1527_v17 = vld [vmem:[%s5090_s7 + $0x11] sm:$0xff] }
  0x6b   : > { %3879 = vmatprep.mubr.msk.f32.mxu0 %vm388_vm0, %v5375_v28  ;;  %3760 = vmatmul.mubr.msk.f32.gmra.mrb[6].mxu1 %vm388_vm0, %v5366_v27 }
  0x6c   : > { %3880 = vmatmul.mubr.msk.f32.gmra.mrb[6].mxu0 %vm388_vm0, %v5375_v28  ;;  %3793 = vmatprep.mubr.msk.f32.mxu1 %vm388_vm0, %v5075_v0 }
  0x6d   : > { %3953 = vmatprep.mubr.msk.f32.mxu0 %vm388_vm0, %v5080_v1 }
  0x70   : > { %4266 = vmatpush3.bf16.xpose.msk.msra.mxu1 %vm5094_vm1, %v4264_v43  ;;  %v3238_v43 = vld [vmem:[%s5090_s7 + $0x280] sm:$0xff] }
  0x71   : > { %4458 = vmatpush3.bf16.xpose.msk.msra.mxu0 %vm5094_vm1, %v5403_v45  ;;  %4269 = vmatprep.subr.msk.bf16.mxu1 %vm5094_vm1, %v4267_v46  ;;  %v3239_v46 = vld [vmem:[%s5090_s7 + $0x288] sm:$0xff] }
  0x72   : > { %4461 = vmatprep.subr.msk.bf16.mxu0 %vm5094_vm1, %v5407_v49  ;;  %v5473_v57 = vpack.c.bf16 %v3239_v46, %v3238_v43  ;;  %v5518_v46 = vpack.c.bf16 %v3161_v39, %v3160_v38 }
  0x78   : > { %4272 = vmatpush3.bf16.xpose.msk.msra.mxu1 %vm5094_vm1, %v4270_v61  ;;  %v3158_v61 = vld [vmem:[%s5090_s7 + $0x321] sm:$0xff] }
  0x79   : > { %4464 = vmatpush3.bf16.xpose.msk.msra.mxu0 %vm5094_vm1, %v5427_v63  ;;  %4275 = vmatprep.subr.msk.bf16.mxu1 %vm5094_vm1, %v4273_v11  ;;  %v3159_v11 = vld [vmem:[%s5090_s7 + $0x329] sm:$0xff] }
  0x7a   : > { %4467 = vmatprep.subr.msk.bf16.mxu0 %vm5094_vm1, %v5429_v12  ;;  %v5495_v21 = vpack.c.bf16 %v3159_v11, %v3158_v61  ;;  %v3261_v61 = vld [vmem:[%s5090_s7 + $0x360] sm:$0xff] }
  0x7b   : > { %v5542_v14 = vpack.c.bf16 %v3261_v61, %v3260_v60  ;;  %v3248_v60 = vld [vmem:[%s5090_s7 + $0x2e0] sm:$0xff]  ;;  %v3249_v61 = vld [vmem:[%s5090_s7 + $0x2e8] sm:$0xff] }
  0x80   : > { %4278 = vmatpush3.bf16.xpose.msk.msra.mxu1 %vm5094_vm1, %v4276_v29  ;;  %v3224_v29 = vld [vmem:[%s5090_s7 + $0x1f0] sm:$0xff] }
  0x81   : > { %4470 = vmatpush3.bf16.xpose.msk.msra.mxu0 %vm5094_vm1, %v5449_v31  ;;  %4281 = vmatprep.subr.msk.bf16.mxu1 %vm5094_vm1, %v4279_v35  ;;  %v3225_v35 = vld [vmem:[%s5090_s7 + $0x1f8] sm:$0xff] }
  0x82   : > { %4473 = vmatprep.subr.msk.bf16.mxu0 %vm5094_vm1, %v5451_v37  ;;  %v5516_v43 = vpack.c.bf16 %v3225_v35, %v3224_v29  ;;  %v3262_v29 = vld [vmem:[%s5090_s7 + $0x370] sm:$0xff]  ;;  %v3263_v35 = vld [vmem:[%s5090_s7 + $0x378] sm:$0xff] }
  0x83   : > { %v5577_v39 = vpack.c.bf16 %v3263_v35, %v3262_v29  ;;  %v3269_v29 = vld [vmem:[%s5090_s7 + $0x3b0] sm:$0xff] }
  0x88   : > { %4284 = vmatpush3.bf16.xpose.msk.msra.mxu1 %vm5094_vm1, %v4282_v53  ;;  %v3243_v53 = vld [vmem:[%s5090_s7 + $0x2b0] sm:$0xff] }
  0x89   : > { %4476 = vmatpush3.bf16.xpose.msk.msra.mxu0 %vm5094_vm1, %v5471_v55  ;;  %4287 = vmatprep.subr.msk.bf16.mxu1 %vm5094_vm1, %v5473_v57  ;;  %v5540_v11 = vpack.c.bf16 %v3243_v53, %v3242_v52  ;;  %v3264_v52 = vld [vmem:[%s5090_s7 + $0x380] sm:$0xff]  ;;  %v3265_v53 = vld [vmem:[%s5090_s7 + $0x388] sm:$0xff] }
  0x8a   : > { %4479 = vmatprep.subr.msk.bf16.mxu0 %vm5094_vm1, %v4477_v58  ;;  %v1525_v58 = vld [vmem:[%s5090_s7 + $0x1] sm:$0xff] }
  0x8b   : > { %v4492_v13 = vpack.c.bf16 %v1526_v59, %v1525_v58  ;;  %v5605_v58 = vld [vmem:[%s6398_s1 + $0x40] sm:$0xff]  ;;  %v5617_v59 = vpack.c.bf16 %v3265_v53, %v3264_v52 }
  0x90   : > { %4290 = vmatpush3.bf16.xpose.msk.msra.mxu1 %vm5094_vm1, %v5493_v18 }
  0x91   : > { %4482 = vmatpush3.bf16.xpose.msk.msra.mxu0 %vm5094_vm1, %v5495_v21  ;;  %4293 = vmatprep.subr.msk.bf16.mxu1 %vm5094_vm1, %v5497_v23 }
  0x92   : > { %4485 = vmatprep.subr.msk.bf16.mxu0 %vm5094_vm1, %v4483_v25  ;;  %v1528_v25 = vld [vmem:[%s5090_s7 + $0x19] sm:$0xff] }
  0x98   : > { %4296 = vmatpush3.bf16.xpose.msk.msra.mxu1 %vm5094_vm1, %v5516_v43 }
  0x99   : > { %4488 = vmatpush3.bf16.xpose.msk.msra.mxu0 %vm5094_vm1, %v5518_v46  ;;  %4299 = vmatprep.subr.msk.bf16.mxu1 %vm5094_vm1, %v5520_v51 }
  0x9a   : > { %4491 = vmatprep.subr.msk.bf16.mxu0 %vm5094_vm1, %v5251_v34  ;;  %v3244_v34 = vld [vmem:[%s5090_s7 + $0x2b8] sm:$0xff] }
  0x9b   : > { %v5571_v38 = vpack.c.bf16 %v3245_v16, %v3244_v34  ;;  %v3267_v34 = vld [vmem:[%s5090_s7 + $0x3a0] sm:$0xff]  ;;  %v5637_v16 = vpack.c.bf16 %v3249_v61, %v3248_v60  ;;  %v3272_v60 = vld [vmem:[%s5090_s7 + $0x3d0] sm:$0xff]  ;;  %v3273_v61 = vld [vmem:[%s5090_s7 + $0x3d8] sm:$0xff] }
  0x9f   : > { %3794 = vmatmul.mubr.msk.f32.vlgmr.msra.gmra.mrb[8].mxu1 %vm388_vm0, %v5075_v0 }
  0xa0   : > { %4302 = vmatpush3.bf16.xpose.msk.msra.mxu1 %vm5094_vm1, %v5540_v11  ;;  %3954 = vmatmul.mubr.msk.f32.vlgmr.msra.gmra.mrb[8].mxu0 %vm388_vm0, %v5080_v1 }
  0xa1   : > { %4494 = vmatpush3.bf16.xpose.msk.msra.mxu0 %vm5094_vm1, %v4492_v13  ;;  %4305 = vmatprep.subr.msk.bf16.mxu1 %vm5094_vm1, %v5542_v14  ;;  %v3266_v13 = vld [vmem:[%s5090_s7 + $0x398] sm:$0xff] }
  0xa2   : > { %4497 = vmatprep.subr.msk.bf16.mxu0 %vm5094_vm1, %v5276_v48  ;;  %3795 = vmatprep.mubr.msk.f32.mxu1 %vm388_vm0, %v5308_v4  ;;  %v4498_v48 = vpack.c.bf16 %v1528_v25, %v1527_v17  ;;  %v5639_v17 = vpack.c.bf16 %v3267_v34, %v3266_v13  ;;  %v3268_v25 = vld [vmem:[%s5090_s7 + $0x3a8] sm:$0xff]  ;;  %v4339_v34 = vpack.c.bf16 %v3273_v61, %v3272_v60  ;;  %v1591_v60 = vld [vmem:[%s5090_s7 + $0x291] sm:$0xff]  ;;  %v1592_v61 = vld [vmem:[%s5090_s7 + $0x299] sm:$0xff] }
  0xa3   : > { %3955 = vmatprep.mubr.msk.f32.mxu0 %vm388_vm0, %v5317_v6  ;;  %3796 = vmatmul.mubr.msk.f32.gmra.mrb[10].mxu1 %vm388_vm0, %v5308_v4 }
  0xa4   : > { %3956 = vmatmul.mubr.msk.f32.gmra.mrb[10].mxu0 %vm388_vm0, %v5317_v6  ;;  %3797 = vmatprep.mubr.msk.f32.mxu1 %vm388_vm0, %v5322_v8 }
  0xa5   : > { %3957 = vmatprep.mubr.msk.f32.mxu0 %vm388_vm0, %v5327_v9 }
  0xa7   : > { %3798 = vmatmul.mubr.msk.f32.gmra.mrb[12].mxu1 %vm388_vm0, %v5322_v8 }
  0xa8   : > { %4308 = vmatpush3.bf16.xpose.msk.msra.mxu1 %vm5094_vm1, %v5571_v38  ;;  %3958 = vmatmul.mubr.msk.f32.gmra.mrb[12].mxu0 %vm388_vm0, %v5327_v9 }
  0xa9   : > { %4500 = vmatpush3.bf16.xpose.msk.msra.mxu0 %vm5094_vm1, %v4498_v48  ;;  %4311 = vmatprep.subr.msk.bf16.mxu1 %vm5094_vm1, %v5577_v39  ;;  %v5659_v48 = vpack.c.bf16 %v3269_v29, %v3268_v25 }
  0xaa   : > { %4503 = vmatprep.subr.msk.bf16.mxu0 %vm5094_vm1, %v5104_v10  ;;  %3799 = vmatprep.mubr.msk.f32.mxu1 %vm388_vm0, %v5366_v27  ;;  %v5611_v10 = vpack.c.bf16 %v3247_v41, %v3246_v40  ;;  %v3270_v40 = vld [vmem:[%s5090_s7 + $0x3c0] sm:$0xff]  ;;  %v3271_v41 = vld [vmem:[%s5090_s7 + $0x3c8] sm:$0xff] }
  0xab   : > { %3959 = vmatprep.mubr.msk.f32.mxu0 %vm388_vm0, %v5375_v28  ;;  %3800 = vmatmul.mubr.msk.f32.gmra.mrb[14].mxu1 %vm388_vm0, %v5366_v27  ;;  %v4333_v53 = vpack.c.bf16 %v3271_v41, %v3270_v40  ;;  %v3132_v40 = vld [vmem:[%s5090_s7 + $0x219] sm:$0xff]  ;;  %v3133_v41 = vld [vmem:[%s5090_s7 + $0x221] sm:$0xff] }
  0xac   : > { %3960 = vmatmul.mubr.msk.f32.gmra.mrb[14].mxu0 %vm388_vm0, %v5375_v28  ;;  %3833 = vmatprep.mubr.msk.f32.mxu1 %vm388_vm0, %v5075_v0 }
  0xad   : > { %3993 = vmatprep.mubr.msk.f32.mxu0 %vm388_vm0, %v5605_v58 }
  0xb0   : > { %4314 = vmatpush3.bf16.xpose.msk.msra.mxu1 %vm5094_vm1, %v5611_v10 }
  0xb1   : > { %4506 = vmatpush3.bf16.xpose.msk.msra.mxu0 %vm5094_vm1, %v5111_v15  ;;  %4317 = vmatprep.subr.msk.bf16.mxu1 %vm5094_vm1, %v5617_v59  ;;  %v3250_v15 = vld [vmem:[%s5090_s7 + $0x2f8] sm:$0xff] }
  0xb2   : > { %4509 = vmatprep.subr.msk.bf16.mxu0 %vm5094_vm1, %v5121_v20  ;;  %v3251_v20 = vld [vmem:[%s5090_s7 + $0x300] sm:$0xff] }
  0xb3   : > { %v5657_v35 = vpack.c.bf16 %v3251_v20, %v3250_v15  ;;  %v3130_v15 = vld [vmem:[%s5090_s7 + $0x209] sm:$0xff]  ;;  %v3131_v20 = vld [vmem:[%s5090_s7 + $0x211] sm:$0xff] }
  0xb4   : > { %v5713_v29 = vpack.c.bf16 %v3131_v20, %v3130_v15  ;;  %v4594_v15 = vpack.c.bf16 %v1592_v61, %v1591_v60  ;;  %v3140_v61 = vld [vmem:[%s5090_s7 + $0x269] sm:$0xff] }
  0xb8   : > { %4320 = vmatpush3.bf16.xpose.msk.msra.mxu1 %vm5094_vm1, %v5637_v16 }
  0xb9   : > { %4512 = vmatpush3.bf16.xpose.msk.msra.mxu0 %vm5094_vm1, %v5139_v30  ;;  %4323 = vmatprep.subr.msk.bf16.mxu1 %vm5094_vm1, %v5639_v17  ;;  %v3252_v30 = vld [vmem:[%s5090_s7 + $0x308] sm:$0xff] }
  0xba   : > { %4515 = vmatprep.subr.msk.bf16.mxu0 %vm5094_vm1, %v5141_v32  ;;  %v3253_v32 = vld [vmem:[%s5090_s7 + $0x310] sm:$0xff] }
  0xbb   : > { %v5677_v52 = vpack.c.bf16 %v3253_v32, %v3252_v30  ;;  %v1589_v30 = vld [vmem:[%s5090_s7 + $0x281] sm:$0xff]  ;;  %v1590_v32 = vld [vmem:[%s5090_s7 + $0x289] sm:$0xff] }
  0xc0   : > { %4326 = vmatpush3.bf16.xpose.msk.msra.mxu1 %vm5094_vm1, %v5657_v35 }
  0xc1   : > { %4518 = vmatpush3.bf16.xpose.msk.msra.mxu0 %vm5094_vm1, %v5161_v42  ;;  %4329 = vmatprep.subr.msk.bf16.mxu1 %vm5094_vm1, %v5659_v48  ;;  %v3254_v42 = vld [vmem:[%s5090_s7 + $0x320] sm:$0xff] }
  0xc2   : > { %4521 = vmatprep.subr.msk.bf16.mxu0 %vm5094_vm1, %v5163_v44  ;;  %v3255_v44 = vld [vmem:[%s5090_s7 + $0x328] sm:$0xff] }
  0xc3   : > { %v5694_v13 = vpack.c.bf16 %v3255_v44, %v3254_v42  ;;  %v5737_v42 = vpack.c.bf16 %v3133_v41, %v3132_v40  ;;  %v5750_v44 = vld [vmem:[%s6398_s1 + $0x48] sm:$0xff]  ;;  %v3138_v41 = vld [vmem:[%s5090_s7 + $0x259] sm:$0xff] }
  0xc4   : > { %v3121_v40 = vld [vmem:[%s5090_s7 + $0x1a9] sm:$0xff] }
  0xc8   : > { %4332 = vmatpush3.bf16.xpose.msk.msra.mxu1 %vm5094_vm1, %v5677_v52 }
  0xc9   : > { %4524 = vmatpush3.bf16.xpose.msk.msra.mxu0 %vm5094_vm1, %v5183_v54  ;;  %4335 = vmatprep.subr.msk.bf16.mxu1 %vm5094_vm1, %v4333_v53  ;;  %v3256_v54 = vld [vmem:[%s5090_s7 + $0x330] sm:$0xff]  ;;  %v5735_v53 = vpack.c.bf16 %v1590_v32, %v1589_v30 }
  0xca   : > { %4527 = vmatprep.subr.msk.bf16.mxu0 %vm5094_vm1, %v5185_v56  ;;  %v3257_v56 = vld [vmem:[%s5090_s7 + $0x338] sm:$0xff]  ;;  %v3137_v30 = vld [vmem:[%s5090_s7 + $0x249] sm:$0xff] }
  0xcb   : > { %v5711_v25 = vpack.c.bf16 %v3257_v56, %v3256_v54  ;;  %v3135_v54 = vld [vmem:[%s5090_s7 + $0x239] sm:$0xff]  ;;  %v5771_v56 = vld [vmem:[%s6398_s1 + $0x50] sm:$0xff] }
  0xd0   : > { %4338 = vmatpush3.bf16.xpose.msk.msra.mxu1 %vm5094_vm1, %v5694_v13 }
  0xd1   : > { %4530 = vmatpush3.bf16.xpose.msk.msra.mxu0 %vm5094_vm1, %v5205_v5  ;;  %4341 = vmatprep.subr.msk.bf16.mxu1 %vm5094_vm1, %v4339_v34  ;;  %v3114_v5 = vld [vmem:[%s5090_s7 + $0x169] sm:$0xff]  ;;  %v3134_v34 = vld [vmem:[%s5090_s7 + $0x231] sm:$0xff] }
  0xd2   : > { %4533 = vmatprep.subr.msk.bf16.mxu0 %vm5094_vm1, %v5207_v7  ;;  %v3115_v7 = vld [vmem:[%s5090_s7 + $0x171] sm:$0xff]  ;;  %v5783_v20 = vpack.c.bf16 %v3135_v54, %v3134_v34 }
  0xd3   : > { %v3141_v34 = vld [vmem:[%s5090_s7 + $0x271] sm:$0xff] }
  0xd8   : > { %4344 = vmatpush3.bf16.xpose.msk.msra.mxu1 %vm5094_vm1, %v5711_v25 }
  0xd9   : > { %4536 = vmatpush3.bf16.xpose.msk.msra.mxu0 %vm5094_vm1, %v5227_v19  ;;  %4395 = vmatprep.subr.msk.bf16.mxu1 %vm5094_vm1, %v5713_v29  ;;  %v5733_v19 = vpack.c.bf16 %v3115_v7, %v3114_v5  ;;  %v3119_v5 = vld [vmem:[%s5090_s7 + $0x199] sm:$0xff]  ;;  %v3136_v7 = vld [vmem:[%s5090_s7 + $0x241] sm:$0xff] }
  0xda   : > { %4587 = vmatprep.subr.msk.bf16.mxu0 %vm5094_vm1, %v5495_v21  ;;  %v3116_v21 = vld [vmem:[%s5090_s7 + $0x179] sm:$0xff] }
  0xdf   : > { %3834 = vmatmul.mubr.msk.f32.vlgmr.msra.gmra.mrb[16].mxu1 %vm388_vm0, %v5075_v0  ;;  %v3117_v0 = vld [vmem:[%s5090_s7 + $0x181] sm:$0xff] }
  0xe0   : > { %4398 = vmatpush3.bf16.xpose.msk.msra.mxu1 %vm5094_vm1, %v5733_v19  ;;  %3994 = vmatmul.mubr.msk.f32.vlgmr.msra.gmra.mrb[0].mxu0 %vm388_vm0, %v5605_v58 }
  0xe1   : > { %4590 = vmatpush3.bf16.xpose.msk.msra.mxu0 %vm5094_vm1, %v5735_v53  ;;  %4401 = vmatprep.subr.msk.bf16.mxu1 %vm5094_vm1, %v5737_v42 }
  0xe2   : > { %4593 = vmatprep.subr.msk.bf16.mxu0 %vm5094_vm1, %v5518_v46  ;;  %3835 = vmatprep.mubr.msk.f32.mxu1 %vm388_vm0, %v5308_v4  ;;  %v5777_v46 = vpack.c.bf16 %v3117_v0, %v3116_v21  ;;  %v3139_v21 = vld [vmem:[%s5090_s7 + $0x261] sm:$0xff] }
  0xe3   : > { %3995 = vmatprep.mubr.msk.f32.mxu0 %vm388_vm0, %v5750_v44  ;;  %3836 = vmatmul.mubr.msk.f32.gmra.mrb[18].mxu1 %vm388_vm0, %v5308_v4  ;;  %v5797_v4 = vld [vmem:[%s6398_s1 + $0x58] sm:$0xff]  ;;  %v5845_v60 = vpack.c.bf16 %v3139_v21, %v3138_v41  ;;  %v2240_v41 = vld [vmem:[%s5090_s7 + $0xe0] sm:$0xff] }
  0xe4   : > { %3996 = vmatmul.mubr.msk.f32.gmra.mrb[2].mxu0 %vm388_vm0, %v5750_v44  ;;  %3837 = vmatprep.mubr.msk.f32.mxu1 %vm388_vm0, %v5322_v8 }
  0xe5   : > { %3997 = vmatprep.mubr.msk.f32.mxu0 %vm388_vm0, %v5771_v56 }
  0xe7   : > { %3838 = vmatmul.mubr.msk.f32.gmra.mrb[20].mxu1 %vm388_vm0, %v5322_v8  ;;  %v3118_v8 = vld [vmem:[%s5090_s7 + $0x191] sm:$0xff] }
  0xe8   : > { %4404 = vmatpush3.bf16.xpose.msk.msra.mxu1 %vm5094_vm1, %v5777_v46  ;;  %3998 = vmatmul.mubr.msk.f32.gmra.mrb[4].mxu0 %vm388_vm0, %v5771_v56  ;;  %v5817_v32 = vpack.c.bf16 %v3119_v5, %v3118_v8  ;;  %v5865_v8 = vpack.c.bf16 %v3141_v34, %v3140_v61  ;;  %v2909_v61 = vld [vmem:[%s6399_s2] sm:$0xff] }
  0xe9   : > { %4596 = vmatpush3.bf16.xpose.msk.msra.mxu0 %vm5094_vm1, %v4594_v15  ;;  %4407 = vmatprep.subr.msk.bf16.mxu1 %vm5094_vm1, %v5783_v20 }
  0xea   : > { %4599 = vmatprep.subr.msk.bf16.mxu0 %vm5094_vm1, %v5278_v50  ;;  %3839 = vmatprep.mubr.msk.f32.mxu1 %vm388_vm0, %v5366_v27  ;;  %v5823_v50 = vpack.c.bf16 %v3137_v30, %v3136_v7  ;;  %v3127_v7 = vld [vmem:[%s5090_s7 + $0x1e9] sm:$0xff] }
  0xeb   : > { %3999 = vmatprep.mubr.msk.f32.mxu0 %vm388_vm0, %v5797_v4  ;;  %3840 = vmatmul.mubr.msk.f32.gmra.mrb[22].mxu1 %vm388_vm0, %v5366_v27  ;;  %v3120_v27 = vld [vmem:[%s5090_s7 + $0x1a1] sm:$0xff] }
  0xec   : > { %4000 = vmatmul.mubr.msk.f32.gmra.mrb[6].mxu0 %vm388_vm0, %v5797_v4  ;;  %3913 = vmatprep.mubr.msk.f32.mxu1 %vm388_vm0, %v5080_v1  ;;  %v5843_v0 = vpack.c.bf16 %v3121_v40, %v3120_v27  ;;  %v2222_v27 = vld [vmem:[%s5090_s7 + $0x30] sm:$0xff]  ;;  %v2239_v40 = vld [vmem:[%s5090_s7 + $0xd8] sm:$0xff] }
  0xed   : > { %4073 = vmatprep.mubr.msk.f32.mxu0 %vm388_vm0, %v5605_v58  ;;  %v4651_v21 = vpack.c.bf16 %v2240_v41, %v2239_v40 }
  0xf0   : > { %4410 = vmatpush3.bf16.xpose.msk.msra.mxu1 %vm5094_vm1, %v5817_v32 }
  0xf1   : > { %4602 = vmatpush3.bf16.xpose.msk.msra.mxu0 %vm5094_vm1, %v5299_v62  ;;  %4413 = vmatprep.subr.msk.bf16.mxu1 %vm5094_vm1, %v5823_v50  ;;  %v3122_v62 = vld [vmem:[%s5090_s7 + $0x1b9] sm:$0xff] }
  0xf2   : > { %4605 = vmatprep.subr.msk.bf16.mxu0 %vm5094_vm1, %v5301_v3  ;;  %v3123_v3 = vld [vmem:[%s5090_s7 + $0x1c1] sm:$0xff] }
  0xf3   : > { %v5863_v54 = vpack.c.bf16 %v3123_v3, %v3122_v62  ;;  %v2224_v3 = vld [vmem:[%s5090_s7 + $0x40] sm:$0xff] }
  0xf8   : > { %4416 = vmatpush3.bf16.xpose.msk.msra.mxu1 %vm5094_vm1, %v5843_v0 }
  0xf9   : > { %4608 = vmatpush3.bf16.xpose.msk.msra.mxu0 %vm5094_vm1, %v5355_v24  ;;  %4419 = vmatprep.subr.msk.bf16.mxu1 %vm5094_vm1, %v5845_v60  ;;  %v3124_v24 = vld [vmem:[%s5090_s7 + $0x1c9] sm:$0xff] }
  0xfa   : > { %4611 = vmatprep.subr.msk.bf16.mxu0 %vm5094_vm1, %v5359_v26  ;;  %v3125_v26 = vld [vmem:[%s5090_s7 + $0x1d1] sm:$0xff] }
  0xfb   : > { %v5881_v5 = vpack.c.bf16 %v3125_v26, %v3124_v24  ;;  %v2242_v24 = vld [vmem:[%s5090_s7 + $0xf8] sm:$0xff]  ;;  %v2910_v26 = vld [vmem:[%s6399_s2 + $0x8] sm:$0xff] }
 0x100   : > { %4422 = vmatpush3.bf16.xpose.msk.msra.mxu1 %vm5094_vm1, %v5863_v54 }
 0x101   : > { %4614 = vmatpush3.bf16.xpose.msk.msra.mxu0 %vm5094_vm1, %v5403_v45  ;;  %4425 = vmatprep.subr.msk.bf16.mxu1 %vm5094_vm1, %v5865_v8  ;;  %v3126_v45 = vld [vmem:[%s5090_s7 + $0x1e1] sm:$0xff] }
 0x102   : > { %4617 = vmatprep.subr.msk.bf16.mxu0 %vm5094_vm1, %v5407_v49  ;;  %v4432_v49 = vpack.c.bf16 %v3127_v7, %v3126_v45  ;;  %v2912_v7 = vld [vmem:[%s6399_s2 + $0x18] sm:$0xff] }
 0x108   : > { %4428 = vmatpush3.bf16.xpose.msk.msra.mxu1 %vm5094_vm1, %v5881_v5 }
 0x109   : > { %4620 = vmatpush3.bf16.xpose.msk.msra.mxu0 %vm5094_vm1, %v5427_v63  ;;  %4431 = vmatprep.subr.msk.bf16.mxu1 %vm5094_vm1, %v5735_v53  ;;  %v3128_v63 = vld [vmem:[%s5090_s7 + $0x1f1] sm:$0xff]  ;;  %v3129_v53 = vld [vmem:[%s5090_s7 + $0x1f9] sm:$0xff] }
 0x10a   : > { %4623 = vmatprep.subr.msk.bf16.mxu0 %vm5094_vm1, %v5429_v12  ;;  %v4438_v12 = vpack.c.bf16 %v3129_v53, %v3128_v63 }
 0x110   : > { %4434 = vmatpush3.bf16.xpose.msk.msra.mxu1 %vm5094_vm1, %v4432_v49 }
 0x111   : > { %4626 = vmatpush3.bf16.xpose.msk.msra.mxu0 %vm5094_vm1, %v5449_v31  ;;  %4437 = vmatprep.subr.msk.bf16.mxu1 %vm5094_vm1, %v4594_v15  ;;  %v2217_v31 = vld [vmem:[%s5090_s7] sm:$0xff] }
 0x112   : > { %4629 = vmatprep.subr.msk.bf16.mxu0 %vm5094_vm1, %v5451_v37  ;;  %v2218_v37 = vld [vmem:[%s5090_s7 + $0x8] sm:$0xff] }
 0x113   : > { %v4636_v15 = vpack.c.bf16 %v2218_v37, %v2217_v31  ;;  %v2226_v31 = vld [vmem:[%s5090_s7 + $0x58] sm:$0xff] }
 0x118   : > { %4440 = vmatpush3.bf16.xpose.msk.msra.mxu1 %vm5094_vm1, %v4438_v12 }
 0x119   : > { %4632 = vmatpush3.bf16.xpose.msk.msra.mxu0 %vm5094_vm1, %v5471_v55  ;;  %4539 = vmatprep.subr.msk.bf16.mxu1 %vm5094_vm1, %v4432_v49  ;;  %v2220_v55 = vld [vmem:[%s5090_s7 + $0x18] sm:$0xff] }
 0x11a   : > { %4635 = vmatprep.subr.msk.bf16.mxu0 %vm5094_vm1, %v5249_v33  ;;  %v2219_v33 = vld [vmem:[%s5090_s7 + $0x10] sm:$0xff] }
 0x11f   : > { %3914 = vmatmul.mubr.msk.f32.vlgmr.msra.gmra.mrb[8].mxu1 %vm388_vm0, %v5080_v1  ;;  %v2237_v1 = vld [vmem:[%s5090_s7 + $0xc8] sm:$0xff] }
 0x120   : > { %4542 = vmatpush3.bf16.xpose.msk.msra.mxu1 %vm5094_vm1, %v5229_v22  ;;  %4074 = vmatmul.mubr.msk.f32.vlgmr.msra.gmra.mrb[8].mxu0 %vm388_vm0, %v5605_v58  ;;  %v2238_v22 = vld [vmem:[%s5090_s7 + $0xd0] sm:$0xff] }
 0x121   : > { %4638 = vmatpush3.bf16.xpose.msk.msra.mxu0 %vm5094_vm1, %v4636_v15  ;;  %4545 = vmatprep.subr.msk.bf16.mxu1 %vm5094_vm1, %v4438_v12  ;;  %v4645_v30 = vpack.c.bf16 %v2238_v22, %v2237_v1  ;;  %v2225_v12 = vld [vmem:[%s5090_s7 + $0x50] sm:$0xff]  ;;  %v2244_v15 = vld [vmem:[%s5090_s7 + $0x108] sm:$0xff] }
 0x122   : > { %4641 = vmatprep.subr.msk.bf16.mxu0 %vm5094_vm1, %v5274_v47  ;;  %4075 = vmatprep.mubr.msk.f32.mxu0 %vm388_vm0, %v5750_v44  ;;  %v4642_v47 = vpack.c.bf16 %v2220_v55, %v2219_v33  ;;  %v4660_v55 = vpack.c.bf16 %v2226_v31, %v2225_v12 }
 0x123   : > { %3915 = vmatprep.mubr.msk.f32.mxu1 %vm388_vm0, %v5317_v6 }
 0x124   : > { %4076 = vmatmul.mubr.msk.f32.gmra.mrb[10].mxu0 %vm388_vm0, %v5750_v44  ;;  %3916 = vmatmul.mubr.msk.f32.gmra.mrb[10].mxu1 %vm388_vm0, %v5317_v6  ;;  %v2221_v6 = vld [vmem:[%s5090_s7 + $0x28] sm:$0xff] }
 0x125   : > { %4077 = vmatprep.mubr.msk.f32.mxu0 %vm388_vm0, %v5771_v56  ;;  %3917 = vmatprep.mubr.msk.f32.mxu1 %vm388_vm0, %v5327_v9 }
 0x128   : > { %4548 = vmatpush3.bf16.xpose.msk.msra.mxu1 %vm5094_vm1, %v5253_v36  ;;  %4078 = vmatmul.mubr.msk.f32.gmra.mrb[12].mxu0 %vm388_vm0, %v5771_v56  ;;  %v5970_v36 = vld [vmem:[%s6398_s1 + $0x60] sm:$0xff] }
 0x129   : > { %4644 = vmatpush3.bf16.xpose.msk.msra.mxu0 %vm5094_vm1, %v4642_v47  ;;  %4551 = vmatprep.subr.msk.bf16.mxu1 %vm5094_vm1, %v5713_v29  ;;  %v4648_v29 = vpack.c.bf16 %v2222_v27, %v2221_v6  ;;  %v2227_v47 = vld [vmem:[%s5090_s7 + $0x60] sm:$0xff]  ;;  %v2245_v6 = vld [vmem:[%s5090_s7 + $0x118] sm:$0xff] }
 0x12a   : > { %4647 = vmatprep.subr.msk.bf16.mxu0 %vm5094_vm1, %v4645_v30  ;;  %3918 = vmatmul.mubr.msk.f32.gmra.mrb[12].mxu1 %vm388_vm0, %v5327_v9  ;;  %v4992_v9 = vmov 0   ;;  %v2228_v30 = vld [vmem:[%s5090_s7 + $0x68] sm:$0xff]  ;;  %v2246_v27 = vld [vmem:[%s5090_s7 + $0x120] sm:$0xff] }
 0x12b   : > { %4079 = vmatprep.mubr.msk.f32.mxu0 %vm388_vm0, %v5797_v4  ;;  %3919 = vmatprep.mubr.msk.f32.mxu1 %vm388_vm0, %v5375_v28  ;;  %v4666_v40 = vpack.c.bf16 %v2228_v30, %v2227_v47  ;;  %v4669_v41 = vpack.c.bf16 %v2246_v27, %v2245_v6  ;;  %v2277_v47 = vld [vmem:[%s5090_s7 + $0x258] sm:$0xff]  ;;  %v2278_v30 = vld [vmem:[%s5090_s7 + $0x260] sm:$0xff] }
 0x12c   : > { %4080 = vmatmul.mubr.msk.f32.gmra.mrb[14].mxu0 %vm388_vm0, %v5797_v4  ;;  %4910 = vset.pattern.permute.xlu0 %v4992_v9  ;;  %v4717_v27 = vpack.c.bf16 %v2278_v30, %v2277_v47 }
 0x12d   : > { %4113 = vmatprep.mubr.msk.f32.mxu0 %vm388_vm0, %v5970_v36  ;;  %4911 = vset.pattern.permute.xlu1 %v4992_v9  ;;  %v2248_v9 = vld [vmem:[%s5090_s7 + $0x130] sm:$0xff] }
 0x12e   : > { %3920 = vmatmul.mubr.msk.f32.gmra.mrb[14].mxu1 %vm388_vm0, %v5375_v28  ;;  %v2223_v28 = vld [vmem:[%s5090_s7 + $0x38] sm:$0xff]  ;;  %2915 = vperm.xlu0 %4910, %v2909_v61  }
 0x12f   : > { %4033 = vmatprep.mubr.msk.f32.mxu1 %vm388_vm0, %v5605_v58  ;;  %v4654_v45 = vpack.c.bf16 %v2224_v3, %v2223_v28 }
 0x130   : > { %4554 = vmatpush3.bf16.xpose.msk.msra.mxu1 %vm5094_vm1, %v5733_v19  ;;  %v2241_v19 = vld [vmem:[%s5090_s7 + $0xf0] sm:$0xff] }
 0x131   : > { %4650 = vmatpush3.bf16.xpose.msk.msra.mxu0 %vm5094_vm1, %v4648_v29  ;;  %4557 = vmatprep.subr.msk.bf16.mxu1 %vm5094_vm1, %v5737_v42  ;;  %v2911_v42 = vld [vmem:[%s6399_s2 + $0x10] sm:$0xff]  ;;  %v4657_v49 = vpack.c.bf16 %v2242_v24, %v2241_v19  ;;  %v2247_v29 = vld [vmem:[%s5090_s7 + $0x128] sm:$0xff] }
 0x132   : > { %v5994_v62 = vpop.f32.mrb[0].mxu1  ;;  %4653 = vmatprep.subr.msk.bf16.mxu0 %vm5094_vm1, %v4651_v21  ;;  %2925 = vperm.xlu1 %4911, %v2911_v42   ;;  %v4675_v28 = vpack.c.bf16 %v2248_v9, %v2247_v29  ;;  %v6116_v19 = vld [vmem:[%s6398_s1 + $0x70] sm:$0xff] }
 0x133   : > { %v6003_v34 = vpop.f32.mrb[1].mxu1  ;;  %2920 = vperm.xlu0 %4910, %v2910_v26   ;;  %v2254_v42 = vld [vmem:[%s5090_s7 + $0x170] sm:$0xff]  ;;  %v2271_v26 = vld [vmem:[%s5090_s7 + $0x218] sm:$0xff] }
 0x134   : > { %v2264_v29 = vld [vmem:[%s5090_s7 + $0x1d0] sm:$0xff] }
 0x136   : > { %v6016_v63 = vpop.f32.mrb[2].mxu1  ;;  %2930 = vperm.xlu1 %4911, %v2912_v7  }
 0x137   : > { %v6018_v53 = vpop.f32.mrb[3].mxu1 }
 0x138   : > { %4560 = vmatpush3.bf16.xpose.msk.msra.mxu1 %vm5094_vm1, %v5777_v46  ;;  %v2243_v46 = vld [vmem:[%s5090_s7 + $0x100] sm:$0xff] }
 0x139   : > { %4656 = vmatpush3.bf16.xpose.msk.msra.mxu0 %vm5094_vm1, %v4654_v45  ;;  %4563 = vmatprep.subr.msk.bf16.mxu1 %vm5094_vm1, %v5783_v20  ;;  %v4663_v1 = vpack.c.bf16 %v2244_v15, %v2243_v46  ;;  %v2272_v45 = vld [vmem:[%s5090_s7 + $0x220] sm:$0xff]  ;;  %v2276_v15 = vld [vmem:[%s5090_s7 + $0x248] sm:$0xff] }
 0x13a   : > { %4659 = vmatprep.subr.msk.bf16.mxu0 %vm5094_vm1, %v4657_v49  ;;  %v6032_v37 = vpop.f32.mrb[4].mxu1  ;;  %v4699_v7 = vpack.c.bf16 %v2272_v45, %v2271_v26  ;;  %v2274_v49 = vld [vmem:[%s5090_s7 + $0x238] sm:$0xff]  ;;  %v2275_v46 = vld [vmem:[%s5090_s7 + $0x240] sm:$0xff] }
 0x13b   : > { %v6036_v33 = vpop.f32.mrb[5].mxu1 }
 0x13e   : > { %v6038_v22 = vpop.f32.mrb[6].mxu1 }
 0x13f   : > { %v6040_v20 = vpop.f32.mrb[7].mxu1 }
 0x140   : > { %4566 = vmatpush3.bf16.xpose.msk.msra.mxu1 %vm5094_vm1, %v5817_v32  ;;  %v2229_v32 = vld [vmem:[%s5090_s7 + $0x78] sm:$0xff] }
 0x141   : > { %4662 = vmatpush3.bf16.xpose.msk.msra.mxu0 %vm5094_vm1, %v4660_v55  ;;  %4569 = vmatprep.subr.msk.bf16.mxu1 %vm5094_vm1, %v5823_v50  ;;  %v2230_v50 = vld [vmem:[%s5090_s7 + $0x80] sm:$0xff] }
 0x142   : > { %4665 = vmatprep.subr.msk.bf16.mxu0 %vm5094_vm1, %v4663_v1  ;;  %v4672_v21 = vpack.c.bf16 %v2230_v50, %v2229_v32  ;;  %v4711_v1 = vpack.c.bf16 %v2276_v15, %v2275_v46 }
 0x148   : > { %4572 = vmatpush3.bf16.xpose.msk.msra.mxu1 %vm5094_vm1, %v5843_v0  ;;  %v2231_v0 = vld [vmem:[%s5090_s7 + $0x88] sm:$0xff] }
 0x149   : > { %4668 = vmatpush3.bf16.xpose.msk.msra.mxu0 %vm5094_vm1, %v4666_v40  ;;  %4575 = vmatprep.subr.msk.bf16.mxu1 %vm5094_vm1, %v5845_v60  ;;  %v2232_v60 = vld [vmem:[%s5090_s7 + $0x90] sm:$0xff]  ;;  %v2262_v40 = vld [vmem:[%s5090_s7 + $0x1c0] sm:$0xff] }
 0x14a   : > { %4671 = vmatprep.subr.msk.bf16.mxu0 %vm5094_vm1, %v4669_v41  ;;  %v4678_v3 = vpack.c.bf16 %v2232_v60, %v2231_v0  ;;  %v2280_v41 = vld [vmem:[%s5090_s7 + $0x270] sm:$0xff] }
 0x150   : > { %4578 = vmatpush3.bf16.xpose.msk.msra.mxu1 %vm5094_vm1, %v5863_v54  ;;  %v2249_v54 = vld [vmem:[%s5090_s7 + $0x140] sm:$0xff] }
 0x151   : > { %4674 = vmatpush3.bf16.xpose.msk.msra.mxu0 %vm5094_vm1, %v4672_v21  ;;  %4581 = vmatprep.subr.msk.bf16.mxu1 %vm5094_vm1, %v5865_v8  ;;  %v2250_v8 = vld [vmem:[%s5090_s7 + $0x148] sm:$0xff] }
 0x152   : > { %4677 = vmatprep.subr.msk.bf16.mxu0 %vm5094_vm1, %v4675_v28  ;;  %v4684_v61 = vpack.c.bf16 %v2250_v8, %v2249_v54 }
 0x158   : > { %4584 = vmatpush3.bf16.xpose.msk.msra.mxu1 %vm5094_vm1, %v5881_v5  ;;  %v6098_v5 = vld [vmem:[%s6398_s1 + $0x68] sm:$0xff] }
 0x159   : > { %4680 = vmatpush3.bf16.xpose.msk.msra.mxu0 %vm5094_vm1, %v4678_v3  ;;  %4683 = vmatprep.subr.msk.bf16.mxu1 %vm5094_vm1, %v5493_v18  ;;  %v2251_v18 = vld [vmem:[%s5090_s7 + $0x150] sm:$0xff] }
 0x15a   : > { %4731 = vmatprep.subr.msk.bf16.mxu0 %vm5094_vm1, %v5694_v13  ;;  %v2252_v13 = vld [vmem:[%s5090_s7 + $0x158] sm:$0xff] }
 0x15b   : > { %v4690_v24 = vpack.c.bf16 %v2252_v13, %v2251_v18 }
 0x15f   : > { %4034 = vmatmul.mubr.msk.f32.vlgmr.msra.gmra.mrb[8].mxu1 %vm388_vm0, %v5605_v58  ;;  %v2270_v58 = vld [vmem:[%s5090_s7 + $0x210] sm:$0xff] }
 0x160   : > { %4114 = vmatmul.mubr.msk.f32.vlgmr.msra.gmra.mrb[0].mxu0 %vm388_vm0, %v5970_v36  ;;  %4686 = vmatpush3.bf16.xpose.msk.msra.mxu1 %vm5094_vm1, %v4684_v61 }
 0x161   : > { %4734 = vmatpush3.bf16.xpose.msk.msra.mxu0 %vm5094_vm1, %v5473_v57  ;;  %4115 = vmatprep.mubr.msk.f32.mxu0 %vm388_vm0, %v6098_v5  ;;  %v2269_v57 = vld [vmem:[%s5090_s7 + $0x208] sm:$0xff] }
 0x162   : > { %4689 = vmatprep.subr.msk.bf16.mxu1 %vm5094_vm1, %v5516_v43  ;;  %4737 = vmatprep.subr.msk.bf16.mxu0 %vm5094_vm1, %v5711_v25  ;;  %v6139_v43 = vld [vmem:[%s6398_s1 + $0x78] sm:$0xff]  ;;  %v4693_v25 = vpack.c.bf16 %v2270_v58, %v2269_v57 }
 0x163   : > { %4035 = vmatprep.mubr.msk.f32.mxu1 %vm388_vm0, %v5750_v44 }
 0x164   : > { %4116 = vmatmul.mubr.msk.f32.gmra.mrb[2].mxu0 %vm388_vm0, %v6098_v5  ;;  %4036 = vmatmul.mubr.msk.f32.gmra.mrb[10].mxu1 %vm388_vm0, %v5750_v44  ;;  %v2253_v44 = vld [vmem:[%s5090_s7 + $0x168] sm:$0xff] }
 0x165   : > { %4117 = vmatprep.mubr.msk.f32.mxu0 %vm388_vm0, %v6116_v19  ;;  %4037 = vmatprep.mubr.msk.f32.mxu1 %vm388_vm0, %v5771_v56 }
 0x168   : > { %4118 = vmatmul.mubr.msk.f32.gmra.mrb[4].mxu0 %vm388_vm0, %v6116_v19  ;;  %4692 = vmatpush3.bf16.xpose.msk.msra.mxu1 %vm5094_vm1, %v4690_v24 }
 0x169   : > { %4740 = vmatpush3.bf16.xpose.msk.msra.mxu0 %vm5094_vm1, %v5497_v23  ;;  %4119 = vmatprep.mubr.msk.f32.mxu0 %vm388_vm0, %v6139_v43  ;;  %v4696_v23 = vpack.c.bf16 %v2254_v42, %v2253_v44 }
 0x16a   : > { %4695 = vmatprep.subr.msk.bf16.mxu1 %vm5094_vm1, %v4693_v25  ;;  %4743 = vmatprep.subr.msk.bf16.mxu0 %vm5094_vm1, %v5520_v51  ;;  %v2255_v51 = vld [vmem:[%s5090_s7 + $0x178] sm:$0xff] }
 0x16b   : > { %4038 = vmatmul.mubr.msk.f32.gmra.mrb[12].mxu1 %vm388_vm0, %v5771_v56  ;;  %v2256_v56 = vld [vmem:[%s5090_s7 + $0x180] sm:$0xff] }
 0x16c   : > { %4120 = vmatmul.mubr.msk.f32.gmra.mrb[6].mxu0 %vm388_vm0, %v6139_v43  ;;  %4039 = vmatprep.mubr.msk.f32.mxu1 %vm388_vm0, %v5797_v4  ;;  %v4702_v12 = vpack.c.bf16 %v2256_v56, %v2255_v51 }
 0x16d   : > { %4193 = vmatprep.mubr.msk.f32.mxu0 %vm388_vm0, %v5970_v36 }
 0x16f   : > { %4040 = vmatmul.mubr.msk.f32.gmra.mrb[14].mxu1 %vm388_vm0, %v5797_v4  ;;  %v2273_v4 = vld [vmem:[%s5090_s7 + $0x230] sm:$0xff] }
 0x170   : > { %4698 = vmatpush3.bf16.xpose.msk.msra.mxu1 %vm5094_vm1, %v4696_v23  ;;  %4153 = vmatprep.mubr.msk.f32.mxu1 %vm388_vm0, %v5970_v36  ;;  %v4705_v31 = vpack.c.bf16 %v2274_v49, %v2273_v4 }
 0x171   : > { %4746 = vmatpush3.bf16.xpose.msk.msra.mxu0 %vm5094_vm1, %v5540_v11  ;;  %4701 = vmatprep.subr.msk.bf16.mxu1 %vm5094_vm1, %v4699_v7  ;;  %v2257_v11 = vld [vmem:[%s5090_s7 + $0x190] sm:$0xff] }
 0x172   : > { %4749 = vmatprep.subr.msk.bf16.mxu0 %vm5094_vm1, %v5542_v14  ;;  %v2258_v14 = vld [vmem:[%s5090_s7 + $0x198] sm:$0xff] }
 0x173   : > { %v4708_v55 = vpack.c.bf16 %v2258_v14, %v2257_v11 }
 0x178   : > { %4704 = vmatpush3.bf16.xpose.msk.msra.mxu1 %vm5094_vm1, %v4702_v12 }
 0x179   : > { %4752 = vmatpush3.bf16.xpose.msk.msra.mxu0 %vm5094_vm1, %v5571_v38  ;;  %4707 = vmatprep.subr.msk.bf16.mxu1 %vm5094_vm1, %v4705_v31  ;;  %v2259_v38 = vld [vmem:[%s5090_s7 + $0x1a0] sm:$0xff] }
 0x17a   : > { %4755 = vmatprep.subr.msk.bf16.mxu0 %vm5094_vm1, %v5577_v39  ;;  %v2260_v39 = vld [vmem:[%s5090_s7 + $0x1a8] sm:$0xff] }
 0x17b   : > { %v4714_v6 = vpack.c.bf16 %v2260_v39, %v2259_v38 }
 0x180   : > { %4710 = vmatpush3.bf16.xpose.msk.msra.mxu1 %vm5094_vm1, %v4708_v55 }
 0x181   : > { %4758 = vmatpush3.bf16.xpose.msk.msra.mxu0 %vm5094_vm1, %v5611_v10  ;;  %4713 = vmatprep.subr.msk.bf16.mxu1 %vm5094_vm1, %v4711_v1  ;;  %v2261_v10 = vld [vmem:[%s5090_s7 + $0x1b8] sm:$0xff] }
 0x182   : > { %4761 = vmatprep.subr.msk.bf16.mxu0 %vm5094_vm1, %v5617_v59  ;;  %v2279_v59 = vld [vmem:[%s5090_s7 + $0x268] sm:$0xff]  ;;  %v4720_v32 = vpack.c.bf16 %v2262_v40, %v2261_v10 }
 0x183   : > { %v4723_v50 = vpack.c.bf16 %v2280_v41, %v2279_v59 }
 0x188   : > { %4716 = vmatpush3.bf16.xpose.msk.msra.mxu1 %vm5094_vm1, %v4714_v6 }
 0x189   : > { %4764 = vmatpush3.bf16.xpose.msk.msra.mxu0 %vm5094_vm1, %v5637_v16  ;;  %4719 = vmatprep.subr.msk.bf16.mxu1 %vm5094_vm1, %v4717_v27  ;;  %v2263_v16 = vld [vmem:[%s5090_s7 + $0x1c8] sm:$0xff]  ;;  %s175_s7 = sand.u32 1, %s4974_s13  }
 0x18a   : > { %4767 = vmatprep.subr.msk.bf16.mxu0 %vm5094_vm1, %v5639_v17  ;;  %v4726_v17 = vpack.c.bf16 %v2264_v29, %v2263_v16  ;;  %s4849_s18 = smul.u32 192, %s175_s7  ;;  %s6351_s28 = scalar_lea.sflag [#allocation3], %s175_s7 }
 0x18c   : > { %s6287_s19 = scalar_lea.vmem [#allocation2], %s4849_s18 }
 0x18d   : > { %s2997_s23 = sshll.u32 %s6287_s19, 4  ;;  %s6344_s23 = int_to_ptr.vmem [resolvable:$true] %s2997_s23 }
 0x18e   : > { %s4912_s29 = scalar_lea.vmem %s6344_s23, 3072  ;;  %p4919_p1 = scmp.lt.s32.totalorder %s6344_s23, %s4917_s4 }
 0x18f   : > { %p4913_p12 = scmp.ne.s32.totalorder %s6344_s23, %s4912_s29  ;;  %p4920_p2 = scmp.lt.s32.totalorder %s4918_s5, %s4912_s29 }
 0x190   : > { %4722 = vmatpush3.bf16.xpose.msk.msra.mxu1 %vm5094_vm1, %v4720_v32 }
 0x191   : > { %4770 = vmatpush3.bf16.xpose.msk.msra.mxu0 %vm5094_vm1, %v5657_v35  ;;  %4725 = vmatprep.subr.msk.bf16.mxu1 %vm5094_vm1, %v4723_v50  ;;  %p4914_p13 = pnand %p4913_p12, %p5056_p4  ;;  %p4921_p3 = por %p4920_p2, %p4919_p1 }
 0x192   : > { %4773 = vmatprep.subr.msk.bf16.mxu0 %vm5094_vm1, %v5659_v48 }
 0x193   : > { %p4915_p0 = pneg %p4914_p13 }
 0x195   : > { %p4922_p5 = pnand %p4921_p3, %p4915_p0 }
 0x198   : > { %4728 = vmatpush3.bf16.xpose.msk.msra.mxu1 %vm5094_vm1, %v4726_v17 }
 0x199   : > { %4776 = vmatpush3.bf16.xpose.msk.msra.mxu0 %vm5094_vm1, %v5677_v52 }
 0x19f   : > { %4154 = vmatmul.mubr.msk.f32.vlgmr.msra.gmra.mrb[8].mxu1 %vm388_vm0, %v5970_v36 }
 0x1a0   : > { %4194 = vmatmul.mubr.msk.f32.vlgmr.msra.gmra.mrb[8].mxu0 %vm388_vm0, %v5970_v36  ;;  %4155 = vmatprep.mubr.msk.f32.mxu1 %vm388_vm0, %v6098_v5 }
 0x1a1   : > { %4195 = vmatprep.mubr.msk.f32.mxu0 %vm388_vm0, %v6098_v5 }
 0x1a3   : > { %4156 = vmatmul.mubr.msk.f32.gmra.mrb[10].mxu1 %vm388_vm0, %v6098_v5 }
 0x1a4   : > { %4196 = vmatmul.mubr.msk.f32.gmra.mrb[10].mxu0 %vm388_vm0, %v6098_v5  ;;  %4157 = vmatprep.mubr.msk.f32.mxu1 %vm388_vm0, %v6116_v19 }
 0x1a5   : > { %4197 = vmatprep.mubr.msk.f32.mxu0 %vm388_vm0, %v6116_v19 }
 0x1a7   : > { %4158 = vmatmul.mubr.msk.f32.gmra.mrb[12].mxu1 %vm388_vm0, %v6116_v19 }
 0x1a8   : > { %4198 = vmatmul.mubr.msk.f32.gmra.mrb[12].mxu0 %vm388_vm0, %v6116_v19  ;;  %4159 = vmatprep.mubr.msk.f32.mxu1 %vm388_vm0, %v6139_v43 }
 0x1a9   : > { %4199 = vmatprep.mubr.msk.f32.mxu0 %vm388_vm0, %v6139_v43 }
 0x1ab   : > { %4160 = vmatmul.mubr.msk.f32.gmra.mrb[14].mxu1 %vm388_vm0, %v6139_v43 }
 0x1ac   : > { %4200 = vmatmul.mubr.msk.f32.gmra.mrb[14].mxu0 %vm388_vm0, %v6139_v43 }
 0x1ad   : > { %v2916_v0 = vpop.permute.xlu0 %2915 }
 0x1b1   : > { %v6293_v58 = vpop.permute.xlu1 %2925 }
 0x1b2   : > { %v933_v2 = vpop.f32.mrb[16].mxu1  ;;  %v2921_v13 = vpop.permute.xlu0 %2920 }
 0x1b3   : > { %v935_v35 = vpop.f32.mrb[17].mxu1 }
 0x1b5   : > { %v6301_v45 = vpop.permute.xlu1 %2930 }
 0x1b6   : > { %v939_v48 = vpop.f32.mrb[18].mxu1 }
 0x1b7   : > { %v6272_v52 = vpop.f32.mrb[19].mxu1 }
 0x1ba   : > { %v6274_v36 = vpop.f32.mrb[20].mxu1 }
 0x1bb   : > { %v6276_v9 = vpop.f32.mrb[21].mxu1 }
 0x1be   : > { %v6278_v21 = vpop.f32.mrb[22].mxu1 }
 0x1bf   : > { %v6280_v28 = vpop.f32.mrb[23].mxu1 }
 0x233   : > { %v2684_v60 = vpop.f32.mrb[0].mxu0 }
 0x234   : > { %v4777_v3 = vadd.f32 %v2684_v60, %v5994_v62  ;;  %v2686_v54 = vpop.f32.mrb[1].mxu0 }
 0x235   : > { %v4778_v8 = vadd.f32 %v2686_v54, %v6003_v34 }
 0x236   : > { %v2933_v61 = vadd.f32 %v4777_v3, %v2916_v0 }
 0x237   : > { %v2934_v5 = vadd.f32 %v4778_v8, %v2916_v0  ;;  %v2690_v18 = vpop.f32.mrb[2].mxu0 }
 0x238   : > { %2957 = vst [vmem:[%s6287_s19] sm:$0xff] %v2933_v61  ;;  %v4779_v19 = vadd.f32 %v2690_v18, %v6016_v63  ;;  %v2692_v57 = vpop.f32.mrb[3].mxu0 }
 0x239   : > { %2958 = vst [vmem:[%s6287_s19 + $0x8] sm:$0xff] %v2934_v5  ;;  %v4780_v62 = vadd.f32 %v2692_v57, %v6018_v53 }
 0x23a   : > { %v2939_v34 = vadd.f32 %v4779_v19, %v2921_v13 }
 0x23b   : > { %v2940_v24 = vadd.f32 %v4780_v62, %v2921_v13  ;;  %v2696_v43 = vpop.f32.mrb[4].mxu0 }
 0x23c   : > { %2963 = vst [vmem:[%s6287_s19 + $0x30] sm:$0xff] %v2939_v34  ;;  %v4781_v25 = vadd.f32 %v2696_v43, %v6032_v37  ;;  %v2698_v44 = vpop.f32.mrb[5].mxu0 }
 0x23d   : > { %2964 = vst [vmem:[%s6287_s19 + $0x38] sm:$0xff] %v2940_v24  ;;  %v4782_v63 = vadd.f32 %v2698_v44, %v6036_v33 }
 0x23e   : > { %v2945_v42 = vadd.f32 %v4781_v25, %v6293_v58 }
 0x23f   : > { %v2946_v26 = vadd.f32 %v4782_v63, %v6293_v58  ;;  %v2702_v53 = vpop.f32.mrb[6].mxu0 }
 0x240   : > { %2969 = vst [vmem:[%s6287_s19 + $0x60] sm:$0xff] %v2945_v42  ;;  %v4783_v23 = vadd.f32 %v2702_v53, %v6038_v22  ;;  %v2704_v7 = vpop.f32.mrb[7].mxu0 }
 0x241   : > { %2970 = vst [vmem:[%s6287_s19 + $0x68] sm:$0xff] %v2946_v26  ;;  %v4784_v37 = vadd.f32 %v2704_v7, %v6040_v20 }
 0x242   : > { %v2951_v51 = vadd.f32 %v4783_v23, %v6301_v45 }
 0x243   : > { %v2952_v33 = vadd.f32 %v4784_v37, %v6301_v45 }
 0x244   : > { %2975 = vst [vmem:[%s6287_s19 + $0x90] sm:$0xff] %v2951_v51 }
 0x245   : > { %2976 = vst [vmem:[%s6287_s19 + $0x98] sm:$0xff] %v2952_v33 }
 0x272   : > { %v2773_v56 = vpop.f32.mrb[8].mxu1 }
 0x273   : > { %v2935_v4 = vadd.f32 %v2916_v0, %v2773_v56  ;;  %v2862_v49 = vpop.f32.mrb[8].mxu0  ;;  %v2775_v12 = vpop.f32.mrb[9].mxu1 }
 0x274   : > { %v4785_v31 = vadd.f32 %v2862_v49, %v933_v2  ;;  %v2936_v11 = vadd.f32 %v2916_v0, %v2775_v12  ;;  %v2864_v22 = vpop.f32.mrb[9].mxu0 }
 0x275   : > { %2959 = vst [vmem:[%s6287_s19 + $0x10] sm:$0xff] %v2935_v4  ;;  %v4786_v14 = vadd.f32 %v2864_v22, %v935_v35 }
 0x276   : > { %v2937_v20 = vadd.f32 %v4785_v31, %v2916_v0  ;;  %2960 = vst [vmem:[%s6287_s19 + $0x18] sm:$0xff] %v2936_v11  ;;  %v2779_v46 = vpop.f32.mrb[10].mxu1 }
 0x277   : > { %v2938_v15 = vadd.f32 %v4786_v14, %v2916_v0  ;;  %v2941_v55 = vadd.f32 %v2921_v13, %v2779_v46  ;;  %v2868_v1 = vpop.f32.mrb[10].mxu0  ;;  %v2781_v38 = vpop.f32.mrb[11].mxu1 }
 0x278   : > { %2961 = vst [vmem:[%s6287_s19 + $0x20] sm:$0xff] %v2937_v20  ;;  %v4787_v39 = vadd.f32 %v2868_v1, %v939_v48  ;;  %v2942_v47 = vadd.f32 %v2921_v13, %v2781_v38  ;;  %v2870_v30 = vpop.f32.mrb[11].mxu0 }
 0x279   : > { %2962 = vst [vmem:[%s6287_s19 + $0x28] sm:$0xff] %v2938_v15  ;;  %2965 = vst [vmem:[%s6287_s19 + $0x40] sm:$0xff] %v2941_v55  ;;  %v4788_v6 = vadd.f32 %v2870_v30, %v6272_v52 }
 0x27a   : > { %v2943_v27 = vadd.f32 %v4787_v39, %v2921_v13  ;;  %2966 = vst [vmem:[%s6287_s19 + $0x48] sm:$0xff] %v2942_v47  ;;  %v2785_v10 = vpop.f32.mrb[12].mxu1 }
 0x27b   : > { %v2944_v40 = vadd.f32 %v4788_v6, %v2921_v13  ;;  %v2947_v59 = vadd.f32 %v6293_v58, %v2785_v10  ;;  %v2874_v41 = vpop.f32.mrb[12].mxu0  ;;  %v2787_v32 = vpop.f32.mrb[13].mxu1 }
 0x27c   : > { %2967 = vst [vmem:[%s6287_s19 + $0x50] sm:$0xff] %v2943_v27  ;;  %v4789_v50 = vadd.f32 %v2874_v41, %v6274_v36  ;;  %v2948_v16 = vadd.f32 %v6293_v58, %v2787_v32  ;;  %v2876_v29 = vpop.f32.mrb[13].mxu0 }
 0x27d   : > { %2968 = vst [vmem:[%s6287_s19 + $0x58] sm:$0xff] %v2944_v40  ;;  %2971 = vst [vmem:[%s6287_s19 + $0x70] sm:$0xff] %v2947_v59  ;;  %v4790_v17 = vadd.f32 %v2876_v29, %v6276_v9 }
 0x27e   : > { %v2949_v2 = vadd.f32 %v4789_v50, %v6293_v58  ;;  %2972 = vst [vmem:[%s6287_s19 + $0x78] sm:$0xff] %v2948_v16  ;;  %v2791_v35 = vpop.f32.mrb[14].mxu1 }
 0x27f   : > { %v2950_v48 = vadd.f32 %v4790_v17, %v6293_v58  ;;  %v2953_v52 = vadd.f32 %v6301_v45, %v2791_v35  ;;  %v2880_v36 = vpop.f32.mrb[14].mxu0  ;;  %v2793_v0 = vpop.f32.mrb[15].mxu1 }
 0x280   : > { %2973 = vst [vmem:[%s6287_s19 + $0x80] sm:$0xff] %v2949_v2  ;;  %v4791_v60 = vadd.f32 %v2880_v36, %v6278_v21  ;;  %v2954_v9 = vadd.f32 %v6301_v45, %v2793_v0  ;;  %v2882_v3 = vpop.f32.mrb[15].mxu0 }
 0x281   : > { %2974 = vst [vmem:[%s6287_s19 + $0x88] sm:$0xff] %v2950_v48  ;;  %2977 = vst [vmem:[%s6287_s19 + $0xa0] sm:$0xff] %v2953_v52  ;;  %v4792_v54 = vadd.f32 %v2882_v3, %v6280_v28 }
 0x282   : > { %v2955_v8 = vadd.f32 %v4791_v60, %v6301_v45  ;;  %2978 = vst [vmem:[%s6287_s19 + $0xa8] sm:$0xff] %v2954_v9 }
 0x283   : > { %v2956_v21 = vadd.f32 %v4792_v54, %v6301_v45 }
 0x284   : > { %2979 = vst [vmem:[%s6287_s19 + $0xb0] sm:$0xff] %v2955_v8 }
 0x285   : > { %2980 = vst [vmem:[%s6287_s19 + $0xb8] sm:$0xff] %v2956_v21 }
 0x286   : > { %4925 = shalt.err (!%p4922_p5)
}
 0x287   : > { %s4926_s6 = scalar_lea.hbm %s6342_s27, 3072  ;;  %s4930_s10 = scalar_lea.hbm %s6400_s3, 6144 }
 0x288   : > { %p4927_p6 = scmp.ne.s32.totalorder %s6342_s27, %s4926_s6  ;;  %p4931_p10 = scmp.lt.u32.totalorder %s6342_s27, %s6400_s3 }
 0x289   : > { %p4932_p11 = scmp.lt.u32.totalorder %s4930_s10, %s4926_s6  ;;  %p4934_p13 = scmp.lt.u32.totalorder %s4926_s6, %s6342_s27 }
 0x28a   : > { %p4928_p7 = pnand %p4927_p6, %p5056_p4 }
 0x28b   : > { %p4933_p12 = por %p4932_p11, %p4931_p10 }
 0x28c   : > { %p4929_p9 = pneg %p4928_p7 }
 0x28d   : > { %p4935_p0 = por %p4934_p13, %p4933_p12 }
 0x28f   : > { %p4936_p1 = pnand %p4935_p0, %p4929_p9 }
 0x291   : > { %4939 = shalt.err (!%p4936_p1)
}
 0x292   : > { %s4994_s18 = smov 768   ;;  %s4995_s19 = smov 48  }
 0x293   : > { %4852 = dma.vmem_to_hbm [thread:$0]  (%p5056_p4), %s6344_s23, 3072, %s6342_s27, %s6351_s28, %s4994_s18, %s4994_s18, %s4995_s19  }
 0x294 PF: > { %p4858_p2 = scmp.ge.s32.totalorder %s4990_s17, 2  ;;  %s3012_s21 = sand.u32 1, %s4970_s12  }
 0x295   : > { %s3013_s15 = scalar_lea.sflag [#allocation3], %s3012_s21 }
 0x296   : > { %p4855_p3 = pnand %p4858_p2, %p5063_p8 }
 0x298   : > { %4965 = dma.done.wait (!%p4855_p3), %s3013_s15, 3072  }
 0x299   : > { %4967 = vsyncadd (!%p4855_p3), %s3013_s15, 4294964224  ;;  %s16_s17 = sadd.s32 1, %s4990_s17   ;;  %s6405_s12 = smov %s4974_s13 }
 0x29a   : > { %p13_p5 = scmp.ge.s32.totalorder %s16_s17, 4   ;;  %s6406_s13 = smov %s4978_s14 }
 0x29b   : > { %s6407_s14 = smov %s5069_s25  ;;  %s6408_s15 = smov %s4986_s16 }
 0x29c   : > { %s6409_s16 = smov %s6411_s20  ;;  %15 = sbr.rel (!%p13_p5) target bundleno = 4 (0x4), region = 72 }
 0x2a3   :  { %3018 = vsyncpa [#allocation3], 1 }
 0x2a4   :  { %3020 = vsyncpa [#allocation3 + $0x1], 1 }

</bundles_post_ra>
